<compile_context>
chip_gen: v7x
topology: tpu7x:2x2x1
jax: 0.10.0
libtpu: 0.0.40
codegen_flags: <defaults>
</compile_context>

<pallas_src>
import functools
import math

import jax
import jax.numpy as jnp
from jax import lax
from jax.experimental import pallas as pl
from jax.experimental.pallas import tpu as pltpu


def _causal_classifier_kernel(x_ref, w_ref, c_ref, y_ref, *,
                              scale, alpha, gamma, tde_branch):
    h = pl.program_id(1)

    @pl.when(h == 0)
    def _():
        y_ref[...] = jnp.zeros_like(y_ref)

    # Compute norms in f32 regardless of the streaming dtype (v5e VPU/EUP have
    # no bf16 elementwise support; bf16 is only for HBM bandwidth).
    x = x_ref[...].astype(jnp.float32)      # (B, head_dim)     one head slice
    w = w_ref[...].astype(jnp.float32)      # (TILE_C, head_dim) one head slice

    # causal_norm per head on the classifier weight: w / (||w||_2 + gamma)
    w_norm = jnp.sqrt(jnp.sum(w * w, axis=-1, keepdims=True))
    nw = w / (w_norm + gamma)

    # l2_norm per head on the features: x * rsqrt(sum(x*x))
    nx = x * lax.rsqrt(jnp.sum(x * x, axis=-1, keepdims=True))

    if tde_branch:
        # TDE branch: subtract the component along the (normalized) moving-mean
        # embedding direction before the scaled matmul.
        c = c_ref[...].astype(jnp.float32)  # (1, head_dim)
        nc = c * lax.rsqrt(jnp.sum(c * c, axis=-1, keepdims=True))
        # nx and nc are already unit-norm, so cos is simply their dot product
        # (the torch code re-divides by norms that are == 1).
        cos_val = jnp.sum(nx * nc, axis=-1, keepdims=True)   # (B, 1)
        lhs = (nx - (cos_val * alpha) * nc) * scale
    else:
        # Training path: y = mm(normed_x * scale, normed_w.T) == sum over heads
        # of the per-head partial matmuls.
        lhs = nx * scale

    # Contract on the shared head_dim axis -> (B, TILE_C); no nw.T materialized.
    y_ref[...] += lax.dot_general(
        lhs, nw,
        dimension_numbers=(((1,), (1,)), ((), ())),
        preferred_element_type=jnp.float32)


def causal_norm_classifier_forward(x, weight, embed, *,
                                   num_head=2, tau=16.0, alpha=3.0,
                                   gamma=0.03125, use_effect=True,
                                   training=False, tile_c=None):
    """Pallas forward of Causal_Norm_Classifier. Returns (y, None).

    x: (B, F), weight: (C, F), embed: (F,). Inputs may be f32 or bf16; bf16
    halves the dominant (weight) HBM traffic, norm math is always f32.
    """
    B, F = x.shape
    C, F2 = weight.shape
    assert F == F2 and F % num_head == 0
    head_dim = F // num_head
    assert head_dim % 128 == 0, (
        "head_dim (feat_dim // num_head) must be a multiple of 128 for TPU "
        "lane tiling")
    scale = tau / num_head

    # Tile the class axis: lane-dense output tiles, bounded VMEM, and enough
    # grid steps for the double-buffer pipeline to hide the weight DMA.
    if tile_c is None:
        tile_c = min(pl.cdiv(C, 128) * 128, 512)
    c_pad = pl.cdiv(C, tile_c) * tile_c
    if c_pad != C:
        # Zero rows normalize to zero under causal_norm (0 / (0 + gamma)), so
        # padded classes contribute exact zeros and are sliced off afterwards.
        weight = jnp.pad(weight, ((0, c_pad - C), (0, 0)))
    n_c_tiles = c_pad // tile_c

    embed2d = jnp.reshape(embed, (1, F)).astype(x.dtype)

    kernel = functools.partial(
        _causal_classifier_kernel,
        scale=scale, alpha=alpha, gamma=gamma,
        tde_branch=(use_effect and not training))

    # VMEM budget (double-buffered weight tile dominates); keep well under
    # v7x's 64 MiB physical VMEM while allowing bigger-than-default tiles.
    est = (2 * tile_c * head_dim * weight.dtype.itemsize
           + 2 * (B + 1) * head_dim * x.dtype.itemsize
           + 2 * B * tile_c * 4)
    vmem_limit = int(min(max(2 * est, 32 * 1024 * 1024), 48 * 1024 * 1024))

    y = pl.pallas_call(
        kernel,
        out_shape=jax.ShapeDtypeStruct((B, c_pad), jnp.float32),
        grid_spec=pltpu.PrefetchScalarGridSpec(
            num_scalar_prefetch=0,
            grid=(n_c_tiles, num_head),        # head (reduction) axis last
            in_specs=[
                pl.BlockSpec((B, head_dim), lambda c, h: (0, h)),
                pl.BlockSpec((tile_c, head_dim), lambda c, h: (c, h)),
                pl.BlockSpec((1, head_dim), lambda c, h: (0, h)),
            ],
            out_specs=pl.BlockSpec((B, tile_c), lambda c, h: (0, c)),
        ),
        compiler_params=pltpu.CompilerParams(
            dimension_semantics=("parallel", "arbitrary"),
            vmem_limit_bytes=vmem_limit),
    )(x, weight, embed2d)

    if c_pad != C:
        y = y[:, :C]
    return y, None


def _reference_forward(x, weight, embed, *, num_head, tau, alpha, gamma,
                       use_effect, training):
    """Pure-JAX reference mirroring the PyTorch module exactly (f32)."""
    F = x.shape[1]
    head_dim = F // num_head
    scale = tau / num_head

    def split(a):
        return [a[:, i * head_dim:(i + 1) * head_dim] for i in range(num_head)]

    def l2n(a):
        return a / jnp.linalg.norm(a, axis=1, keepdims=True)

    def cnorm(a):
        return a / (jnp.linalg.norm(a, axis=1, keepdims=True) + gamma)

    normed_w = jnp.concatenate([cnorm(s) for s in split(weight)], axis=1)
    normed_x = jnp.concatenate([l2n(s) for s in split(x)], axis=1)
    y = (normed_x * scale) @ normed_w.T
    if (not training) and use_effect:
        c2d = jnp.reshape(embed, (1, F))
        normed_c = jnp.concatenate([l2n(s) for s in split(c2d)], axis=1)
        y = jnp.zeros_like(y)
        for nx, nc, nw in zip(split(normed_x), split(normed_c), split(normed_w)):
            cos = (jnp.sum(nx * nc, axis=-1, keepdims=True)
                   / jnp.linalg.norm(nx, axis=1, keepdims=True)
                   / jnp.linalg.norm(nc, axis=1, keepdims=True))
            y = y + ((nx - cos * alpha * nc) * scale) @ nw.T
    return y


if __name__ == "__main__":
    # Module hyper-params (small synthetic sizes; C is non-128-multiple-tiled
    # to exercise the class-axis padding + multi-tile path).
    num_classes = 1000
    feat_dim = 256
    num_head = 2
    tau = 16.0
    alpha = 3.0
    gamma = 0.03125
    batch = 8

    key = jax.random.PRNGKey(0)
    kw, kx, ke, kl = jax.random.split(key, 4)

    # reset_parameters: uniform(-stdv, stdv) with stdv = 1/sqrt(feat_dim)
    stdv = 1.0 / math.sqrt(feat_dim)
    weight = jax.random.uniform(kw, (num_classes, feat_dim),
                                minval=-stdv, maxval=stdv, dtype=jnp.float32)
    x = jax.random.normal(kx, (batch, feat_dim), dtype=jnp.float32)
    embed = jax.random.normal(ke, (feat_dim,), dtype=jnp.float32)
    label = jax.random.randint(kl, (batch,), 0, num_classes)  # unused in forward

    # Eval / use_effect path (the TDE branch).
    y_eval, _ = causal_norm_classifier_forward(
        x, weight, embed, num_head=num_head, tau=tau, alpha=alpha,
        gamma=gamma, use_effect=True, training=False)
    y_eval = jax.block_until_ready(y_eval)

    # Training path (plain scaled normalized matmul).
    y_train, _ = causal_norm_classifier_forward(
        x, weight, embed, num_head=num_head, tau=tau, alpha=alpha,
        gamma=gamma, use_effect=True, training=True)
    y_train = jax.block_until_ready(y_train)

    ref_eval = _reference_forward(x, weight, embed, num_head=num_head, tau=tau,
                                  alpha=alpha, gamma=gamma, use_effect=True,
                                  training=False)
    ref_train = _reference_forward(x, weight, embed, num_head=num_head, tau=tau,
                                   alpha=alpha, gamma=gamma, use_effect=True,
                                   training=True)

    assert y_eval.shape == (batch, num_classes)
    assert y_train.shape == (batch, num_classes)
    assert jnp.allclose(y_eval, ref_eval, rtol=1e-5, atol=1e-5)
    assert jnp.allclose(y_train, ref_train, rtol=1e-5, atol=1e-5)

    # bf16-streaming path (halves weight HBM traffic); sanity-check it runs
    # and stays finite — numerics intentionally looser than f32.
    y_bf16, _ = causal_norm_classifier_forward(
        x.astype(jnp.bfloat16), weight.astype(jnp.bfloat16),
        embed.astype(jnp.bfloat16), num_head=num_head, tau=tau, alpha=alpha,
        gamma=gamma, use_effect=True, training=False)
    y_bf16 = jax.block_until_ready(y_bf16)
    assert y_bf16.shape == (batch, num_classes)
    assert bool(jnp.all(jnp.isfinite(y_bf16)))

    print("KERNEL_OK")
</pallas_src>

<mosaic_0001>
module attributes {stable_mosaic.version = 11 : i64} {
  func.func @_causal_classifier_kernel(%arg0: i32, %arg1: i32, %arg2: memref<8x128xf32, #tpu.memory_space<vmem>>, %arg3: memref<512x128xf32, #tpu.memory_space<vmem>>, %arg4: memref<1x128xf32, #tpu.memory_space<vmem>>, %arg5: memref<8x512xf32, #tpu.memory_space<vmem>>) attributes {dimension_semantics = [#tpu.dimension_semantics<parallel>, #tpu.dimension_semantics<arbitrary>], iteration_bounds = array<i64: 2, 2>, scalar_prefetch = 0 : i64, scratch_operands = 0 : i64, tpu.core_type = #tpu.core_type<tc>, window_params = [{transform_indices = @transform_0, window_bounds = array<i64: 8, 128>}, {transform_indices = @transform_1, window_bounds = array<i64: 512, 128>}, {transform_indices = @transform_2, window_bounds = array<i64: 1, 128>}, {transform_indices = @transform_3, window_bounds = array<i64: 8, 512>}]} {
    %c0_i32 = arith.constant 0 : i32
    %0 = arith.cmpi eq, %arg1, %c0_i32 : i32
    %1 = arith.extui %0 : i1 to i32
    %c0_i32_0 = arith.constant 0 : i32
    %2 = arith.cmpi ne, %1, %c0_i32_0 : i32
    scf.if %2 {
      %cst_17 = arith.constant 0.000000e+00 : f32
      %42 = vector.broadcast %cst_17 : f32 to vector<8x512xf32>
      %c0_18 = arith.constant 0 : index
      %c0_19 = arith.constant 0 : index
      %43 = vector.load %arg5[%c0_18, %c0_19] : memref<8x512xf32, #tpu.memory_space<vmem>>, vector<8x512xf32>
      tpu.vector_store %arg5[%c0_18, %c0_19], %42 {strides = array<i32>} : memref<8x512xf32, #tpu.memory_space<vmem>>, vector<8x512xf32>,
    } else {
    }
    %c0 = arith.constant 0 : index
    %c0_1 = arith.constant 0 : index
    %3 = vector.load %arg2[%c0, %c0_1] : memref<8x128xf32, #tpu.memory_space<vmem>>, vector<8x128xf32>
    %c0_2 = arith.constant 0 : index
    %c0_3 = arith.constant 0 : index
    %4 = vector.load %arg3[%c0_2, %c0_3] : memref<512x128xf32, #tpu.memory_space<vmem>>, vector<512x128xf32>
    %5 = arith.mulf %4, %4 : vector<512x128xf32>
    %cst = arith.constant dense<0.000000e+00> : vector<512xf32>
    %6 = vector.multi_reduction <add>, %5, %cst [1] : vector<512x128xf32> to vector<512xf32>
    %7 = vector.shape_cast %6 : vector<512xf32> to vector<512x1xf32>
    %8 = math.sqrt %7 : vector<512x1xf32>
    %cst_4 = arith.constant 3.125000e-02 : f32
    %9 = vector.broadcast %cst_4 : f32 to vector<512x1xf32>
    %10 = arith.addf %8, %9 : vector<512x1xf32>
    %11 = vector.broadcast %10 : vector<512x1xf32> to vector<512x128xf32>
    %12 = arith.divf %4, %11 : vector<512x128xf32>
    %13 = arith.mulf %3, %3 : vector<8x128xf32>
    %cst_5 = arith.constant dense<0.000000e+00> : vector<8xf32>
    %14 = vector.multi_reduction <add>, %13, %cst_5 [1] : vector<8x128xf32> to vector<8xf32>
    %15 = vector.shape_cast %14 : vector<8xf32> to vector<8x1xf32>
    %16 = math.rsqrt %15 : vector<8x1xf32>
    %17 = vector.broadcast %16 : vector<8x1xf32> to vector<8x128xf32>
    %18 = arith.mulf %3, %17 : vector<8x128xf32>
    %c0_6 = arith.constant 0 : index
    %c0_7 = arith.constant 0 : index
    %19 = vector.load %arg4[%c0_6, %c0_7] : memref<1x128xf32, #tpu.memory_space<vmem>>, vector<1x128xf32>
    %20 = arith.mulf %19, %19 : vector<1x128xf32>
    %cst_8 = arith.constant dense<0.000000e+00> : vector<1xf32>
    %21 = vector.multi_reduction <add>, %20, %cst_8 [1] : vector<1x128xf32> to vector<1xf32>
    %22 = vector.shape_cast %21 : vector<1xf32> to vector<1x1xf32>
    %23 = math.rsqrt %22 : vector<1x1xf32>
    %24 = vector.broadcast %23 : vector<1x1xf32> to vector<1x128xf32>
    %25 = arith.mulf %19, %24 : vector<1x128xf32>
    %26 = vector.broadcast %25 : vector<1x128xf32> to vector<8x128xf32>
    %27 = arith.mulf %18, %26 : vector<8x128xf32>
    %cst_9 = arith.constant dense<0.000000e+00> : vector<8xf32>
    %28 = vector.multi_reduction <add>, %27, %cst_9 [1] : vector<8x128xf32> to vector<8xf32>
    %29 = vector.shape_cast %28 : vector<8xf32> to vector<8x1xf32>
    %cst_10 = arith.constant 3.000000e+00 : f32
    %30 = vector.broadcast %cst_10 : f32 to vector<8x1xf32>
    %31 = arith.mulf %29, %30 : vector<8x1xf32>
    %32 = vector.broadcast %31 : vector<8x1xf32> to vector<8x128xf32>
    %33 = vector.broadcast %25 : vector<1x128xf32> to vector<8x128xf32>
    %34 = arith.mulf %32, %33 : vector<8x128xf32>
    %35 = arith.subf %18, %34 : vector<8x128xf32>
    %cst_11 = arith.constant 8.000000e+00 : f32
    %36 = vector.broadcast %cst_11 : f32 to vector<8x128xf32>
    %37 = arith.mulf %35, %36 : vector<8x128xf32>
    %c0_12 = arith.constant 0 : index
    %c0_13 = arith.constant 0 : index
    %38 = vector.load %arg5[%c0_12, %c0_13] : memref<8x512xf32, #tpu.memory_space<vmem>>, vector<8x512xf32>
    %cst_14 = arith.constant dense<0.000000e+00> : vector<8x512xf32>
    %39 = tpu.matmul %37, %12, %cst_14 {dimension_numbers = #tpu.dot_dimension_numbers<[1], [1], [0], [0], [0, 0, 1, 0], [], []>} : vector<8x128xf32>, vector<512x128xf32>, vector<8x512xf32> -> vector<8x512xf32>
    %40 = arith.addf %38, %39 : vector<8x512xf32>
    %c0_15 = arith.constant 0 : index
    %c0_16 = arith.constant 0 : index
    %41 = vector.load %arg5[%c0_15, %c0_16] : memref<8x512xf32, #tpu.memory_space<vmem>>, vector<8x512xf32>
    tpu.vector_store %arg5[%c0_15, %c0_16], %40 {strides = array<i32>} : memref<8x512xf32, #tpu.memory_space<vmem>>, vector<8x512xf32>,
    return
  }
  func.func @transform_0(%arg0: i32, %arg1: i32) -> (i32, i32) {
    %c0_i32 = arith.constant 0 : i32
    %c0_i32_0 = arith.constant 0 : i32
    return %c0_i32, %arg1 : i32, i32
  }
  func.func @transform_1(%arg0: i32, %arg1: i32) -> (i32, i32) {
    %c0_i32 = arith.constant 0 : i32
    return %arg0, %arg1 : i32, i32
  }
  func.func @transform_2(%arg0: i32, %arg1: i32) -> (i32, i32) {
    %c0_i32 = arith.constant 0 : i32
    %c0_i32_0 = arith.constant 0 : i32
    return %c0_i32, %arg1 : i32, i32
  }
  func.func @transform_3(%arg0: i32, %arg1: i32) -> (i32, i32) {
    %c0_i32 = arith.constant 0 : i32
    %c0_i32_0 = arith.constant 0 : i32
    return %c0_i32, %arg0 : i32, i32
  }
}

</mosaic_0001>

<bundles_post_ra>
// kernel: tpu_custom_call.1
= control target key start
LH: loop header
LB: loop body
LE: loop exit
PB: predicated region body
PF: predicated region fallthrough
CT: control target
= control target key end

     0   :  { %8 = vsyncpa [#allocation3], 0  ;;  %s3719_s0 = inlined_call_operand.hbm [shape: f32[8,256], index: 0, kind: input, shape index: {}]   ;;  %s3720_s1 = inlined_call_operand.hbm [shape: f32[1024,256], index: 1, kind: input, shape index: {}]   ;;  %s3721_s2 = inlined_call_operand.vmem [shape: f32[1,256], index: 2, kind: input, shape index: {}]   ;;  %s3722_s3 = inlined_call_operand.hbm [shape: f32[8,1024], index: 3, kind: output, shape index: {}]  }
   0x1   :  { %10 = vsyncpa [#allocation3 + $0x1], 0 }
   0x2   :  { %11 = vsyncpa [#allocation6], 0 }
   0x3   :  { %13 = vsyncpa [#allocation6 + $0x1], 0 }
   0x4   :  { %14 = vsyncpa [#allocation4], 0 }
   0x5   :  { %16 = vsyncpa [#allocation4 + $0x1], 0  ;;  %s2312_s12 = smov 0   ;;  %s2314_s13 = smov 0  }
   0x6   :  { %s2316_s14 = smov 0   ;;  %s2318_s15 = smov 0  }
   0x7   :  { %s2320_s16 = smov 0   ;;  %s2322_s17 = smov 0  }
   0x8   :  { %s2324_s18 = smov 0   ;;  %s2326_s19 = smov 0  }
   0x9   :  { %s2328_s20 = smov 0   ;;  %s2330_s21 = smov 0  }
   0xa   :  { %s2332_s22 = smov 0   ;;  %s2334_s23 = smov 0  }
   0xb   :  { %s2336_s24 = smov 0   ;;  %s2338_s25 = smov 0  }
   0xc LB: > { %3731 = sst [smem:[#allocation11_spill]] %s2239_s14  ;;  %s1473_s26 = sadd.s32 4294967295, %s2283_s25   ;;  %s2283_s25 = sphi %s2338_s25, %s22_s25   ;;  %s2279_s24 = sphi %s2336_s24, %s3762_s24   ;;  %s2275_s23 = sphi %s2334_s23, %s3772_s23   ;;  %s2271_s22 = sphi %s2332_s22, %s3760_s22   ;;  %s2267_s21 = sphi %s2330_s21, %s3771_s21   ;;  %s2263_s20 = sphi %s2328_s20, %s3759_s20   ;;  %s2259_s19 = sphi %s2326_s19, %s3770_s19   ;;  %s2255_s18 = sphi %s2324_s18, %s3769_s18   ;;  %s2251_s17 = sphi %s2322_s17, %s3768_s17   ;;  %s2247_s16 = sphi %s2320_s16, %s3767_s16   ;;  %s2243_s15 = sphi %s2318_s15, %s3766_s15   ;;  %s2239_s14 = sphi %s2316_s14, %s3756_s14   ;;  %s2235_s13 = sphi %s2314_s13, %s3765_s13   ;;  %s2231_s12 = sphi %s2312_s12, %s3764_s12  }
   0xd   : > { %3732 = sst [smem:[#allocation12_spill]] %s2263_s20  ;;  %s31_s28 = sadd.s32 1, %s2275_s23 }
   0xe   : > { %3733 = sst [smem:[#allocation13_spill]] %s2279_s24  ;;  %s34_s29 = sadd.s32 1, %s2279_s24 }
   0xf   : > { %p32_p0 = scmp.ge.s32.totalorder %s31_s28, 2  ;;  %s41_s30 = sadd.s32 1, %s2263_s20 }
  0x10   : > { %p48_p1 = scmp.ne.s32.totalorder %s2263_s20, %s2259_s19  ;;  %p49_p2 = scmp.eq.s32.totalorder %s2283_s25, 0 }
  0x11   : > { %s3774_s28 = smov (%p32_p0, %s31_s28), 0  ;;  %s3776_s29 = smov (!%p32_p0, %s34_s29), %s2279_s24 }
  0x12   : > { %3734 = sst [smem:[#allocation14_spill]] %s3774_s28  ;;  %s38_s4 = ssub.s32 %s2275_s23, %s3774_s28 }
  0x13   : > { %p2395_p3 = por %p49_p2, %p48_p1  ;;  %p36_p4 = scmp.ge.s32.totalorder %s3776_s29, 2 }
  0x14   : > { %p39_p5 = scmp.eq.s32.totalorder %s38_s4, 0  ;;  %p54_p6 = scmp.ne.s32.totalorder %s2259_s19, %s2255_s18 }
  0x15   : > { %p2402_p7 = scmp.eq.s32.totalorder %s1473_s26, 0  ;;  %s3778_s29 = smov (%p36_p4, %s3776_s29), 0 }
  0x16   : > { %3737 = sst [smem:[#allocation15_spill]] %s3778_s29  ;;  %s64_s9 = ssub.s32 %s2279_s24, %s3778_s29 }
  0x17   : > { %s2409_s7 = scalar_select %p39_p5, %s2263_s20, %s41_s30  }
  0x18   : > { %p2413_p8 = por %p2402_p7, %p54_p6  ;;  %s66_s10 = sor.u32 %s64_s9, %s38_s4 }
  0x19   : > { %3738 = sst [smem:[#allocation16_spill]] %s2409_s7  ;;  %s69_s11 = sadd.s32 1, %s2251_s17 }
  0x1a   : > { %s3739_s8 = scalar_select %p2413_p8, 1, 0 }
  0x1b   : > { %p67_p9 = scmp.eq.s32.totalorder %s66_s10, 0  ;;  %p76_p10 = scmp.ne.s32.totalorder %s2251_s17, %s2247_s16 }
  0x1c   : > { %p82_p11 = scmp.ne.s32.totalorder %s2247_s16, %s2243_s15  ;;  %p119_p12 = scmp.eq.s32.totalorder %s64_s9, 0 }
  0x1d   : > { %s2425_s18 = scalar_select %p67_p9, %s2251_s17, %s69_s11  }
  0x1e   : > { %p2429_p13 = por %p76_p10, %p49_p2  ;;  %p2435_p0 = por %p82_p11, %p2402_p7 }
  0x1f   : > { %3740 = sst [smem:[#allocation17_spill]] %s2425_s18  ;;  %s121_s4 = sadd.s32 1, %s2239_s14 }
  0x20   : > { %s3742_s27 = scalar_select %p2435_p0, 1, 0 }
  0x21   : > { %p131_p1 = scmp.ne.s32.totalorder %s2239_s14, %s2235_s13  ;;  %p132_p4 = scmp.eq.s32.totalorder %s1473_s26, 3 }
  0x22   : > { %s2443_s10 = scalar_select %p119_p12, %s2239_s14, %s121_s4  }
  0x23   : > { %p137_p5 = scmp.ne.s32.totalorder %s2235_s13, %s2231_s12  ;;  %s3744_s15 = sadd.s32 4294967294, %s2283_s25  }
  0x24   : > { %3743 = sst [smem:[#allocation18_spill]] %s2443_s10  ;;  %p138_p2 = scmp.eq.s32.totalorder %s3744_s15, 3 }
  0x25   : > { %p2451_p6 = por %p132_p4, %p131_p1  ;;  %p1644_p7 = scmp.lt.s32.totalorder %s2283_s25, 4 }
  0x26   : > { %p2456_p9 = por %p138_p2, %p137_p5  ;;  %s158_s11 = sand.u32 1, %s2263_s20  }
  0x27   : > { %s3745_s9 = scalar_select %p2451_p6, 1, 0 }
  0x28   : > { %s3746_s6 = scalar_select %p2456_p9, 1, 0 }
  0x29   : > { %s1477_s29 = sshll.u32 %s158_s11, 3  ;;  %s1478_s4 = sshll.u32 %s2275_s23, 7 }
  0x2a   : > { %s2465_s26 = scalar_lea.hbm %s3719_s0, %s1478_s4  ;;  %s162_s15 = scalar_lea.vmem [#allocation2], %s1477_s29 }
  0x2b   : > { %s169_s18 = sshll.u32 %s162_s15, 4  ;;  %p2471_p10 = pnand %p1644_p7, %p2395_p3  ;;  %s2467_s18 = int_to_ptr.vmem [resolvable:$true] %s169_s18 }
  0x2c   : > { %s1493_s20 = sshll.u32 %s2279_s24, 7  ;;  %p2478_p11 = pnand %p1644_p7, %p2429_p13 }
  0x2d   : > { %s2483_s7 = sadd.s32 %s2275_s23, %s1493_s20  ;;  %s159_s29 = scalar_lea.sflag [#allocation3], %s158_s11 }
  0x2e   : > { %s2073_s4 = scalar_lea.hbm %s2465_s26, 128  ;;  %p2075_p1 = pneg %p2471_p10 }
  0x2f   : > { %p2074_p12 = scmp.ne.s32.totalorder %s2465_s26, %s2073_s4  ;;  %s2078_s24 = scalar_lea.hbm %s3719_s0, 256 }
  0x30   : > { %p2079_p13 = scmp.lt.u32.totalorder %s2465_s26, %s3719_s0  ;;  %p2080_p5 = scmp.lt.u32.totalorder %s2078_s24, %s2073_s4 }
  0x31   : > { %p2076_p3 = pnand %p2075_p1, %p2074_p12  ;;  %p2082_p7 = scmp.lt.u32.totalorder %s2073_s4, %s2465_s26 }
  0x32   : > { %p2081_p2 = por %p2080_p5, %p2079_p13 }
  0x33   : > { %p2077_p4 = pneg %p2076_p3 }
  0x34   : > { %p2083_p9 = por %p2082_p7, %p2081_p2 }
  0x36   : > { %p2084_p6 = pnand %p2083_p9, %p2077_p4 }
  0x38   : > { %2087 = shalt.err (!%p2084_p6)
}
  0x39   : > { %s2088_s20 = scalar_lea.vmem %s2467_s18, 128  ;;  %s2285_s11 = smov [#allocation2]  }
  0x3a   : > { %p2089_p12 = scmp.ne.s32.totalorder %s2467_s18, %s2088_s20  ;;  %s2093_s5 = sshll.u32 %s2285_s11, 4  ;;  %s2094_s5 = int_to_ptr.vmem [resolvable:$false] %s2093_s5 }
  0x3b   : > { %s2095_s14 = scalar_lea.vmem %s2094_s5, 256  ;;  %p2096_p8 = scmp.lt.s32.totalorder %s2467_s18, %s2094_s5 }
  0x3c   : > { %p2091_p3 = pnand %p2089_p12, %p2075_p1  ;;  %p2097_p13 = scmp.lt.s32.totalorder %s2095_s14, %s2088_s20 }
  0x3e   : > { %p2092_p0 = pneg %p2091_p3  ;;  %p2098_p5 = por %p2097_p13, %p2096_p8 }
  0x40   : > { %p2099_p2 = pnand %p2098_p5, %p2092_p0 }
  0x42   : > { %2102 = shalt.err (!%p2099_p2)
}
  0x43   : > { %1636 = dma.hbm_to_vmem [thread:$0]  (!%p2471_p10), %s2465_s26, 128, %s2467_s18, %s159_s29  }
  0x44   : > { %p1483_p6 = scmp.ge.s32.totalorder %s2283_s25, 1  ;;  %p203_p9 = scmp.lt.s32.totalorder %s2283_s25, 5 }
  0x45   : > { %s176_s24 = sand.u32 1, %s2251_s17   ;;  %s1482_s30 = sshll.u32 %s2483_s7, 7 }
  0x46   : > { %s1479_s4 = sshll.u32 %s176_s24, 9  ;;  %p2513_p1 = pnand %p1483_p6, %p203_p9 }
  0x47   : > { %s180_s20 = scalar_lea.vmem [#allocation5], %s1479_s4  ;;  %s2521_s14 = scalar_lea.hbm %s3720_s1, %s1482_s30 }
  0x48   : > { %s189_s10 = sshll.u32 %s180_s20, 4  ;;  %s2525_s18 = scalar_lea.sflag [#allocation6], %s176_s24  ;;  %s2523_s10 = int_to_ptr.vmem [resolvable:$true] %s189_s10 }
  0x49   : > { %s2103_s26 = scalar_lea.hbm %s2521_s14, 8192  ;;  %p2105_p0 = pneg %p2478_p11 }
  0x4a   : > { %p2104_p8 = scmp.ne.s32.totalorder %s2521_s14, %s2103_s26  ;;  %s2108_s4 = scalar_lea.hbm %s3720_s1, 32768 }
  0x4b   : > { %p2109_p7 = scmp.lt.u32.totalorder %s2521_s14, %s3720_s1  ;;  %p2110_p12 = scmp.lt.u32.totalorder %s2108_s4, %s2103_s26 }
  0x4c   : > { %p2106_p10 = pnand %p2105_p0, %p2104_p8  ;;  %p2112_p13 = scmp.lt.u32.totalorder %s2103_s26, %s2521_s14 }
  0x4d   : > { %p2111_p3 = por %p2110_p12, %p2109_p7 }
  0x4e   : > { %p2107_p4 = pneg %p2106_p10 }
  0x4f   : > { %p2113_p5 = por %p2112_p13, %p2111_p3 }
  0x51   : > { %p2114_p2 = pnand %p2113_p5, %p2107_p4 }
  0x53   : > { %2117 = shalt.err (!%p2114_p2)
}
  0x54   : > { %s2118_s24 = scalar_lea.vmem %s2523_s10, 8192  ;;  %s2286_s11 = smov [#allocation5]  }
  0x55   : > { %p2119_p6 = scmp.ne.s32.totalorder %s2523_s10, %s2118_s24  ;;  %s2123_s5 = sshll.u32 %s2286_s11, 4  ;;  %s2124_s5 = int_to_ptr.vmem [resolvable:$false] %s2123_s5 }
  0x56   : > { %s2125_s7 = scalar_lea.vmem %s2124_s5, 16384  ;;  %p2126_p10 = scmp.lt.s32.totalorder %s2523_s10, %s2124_s5 }
  0x57   : > { %p2121_p9 = pnand %p2119_p6, %p2105_p0  ;;  %p2127_p7 = scmp.lt.s32.totalorder %s2125_s7, %s2118_s24 }
  0x59   : > { %p2122_p8 = pneg %p2121_p9  ;;  %p2128_p12 = por %p2127_p7, %p2126_p10 }
  0x5b   : > { %p2129_p3 = pnand %p2128_p12, %p2122_p8 }
  0x5d   : > { %2132 = shalt.err (!%p2129_p3)
}
  0x5e   : > { %s2287_s26 = smov 256   ;;  %s2288_s29 = smov 128  }
  0x5f   : > { %s2289_s4 = smov 8   ;;  %207 = sbr.rel (%p2513_p1) target bundleno = 695 (0x2b7), region = 32 }
  0x60   : > { %1639 = dma.hbm_to_vmem [thread:$0]  (!%p2478_p11), %s2521_s14, 8192, %s2523_s10, %s2525_s18, %s2287_s26, %s2288_s29, %s2289_s4  }
  0x61   : > { %s209_s30 = sand.u32 (!%p2513_p1), 1, %s2259_s19   ;;  %p3750_p0 = scmp.ne.s32.totalorder (!%p2513_p1), %s3739_s8, 0 }
  0x62   : > { %s2556_s20 = sshll.u32 (!%p2513_p1), %s209_s30, 3  ;;  %s210_s24 = scalar_lea.sflag (!%p2513_p1), [#allocation3], %s209_s30 }
  0x63   : > { %s213_s11 = scalar_lea.vmem (!%p2513_p1), [#allocation2], %s2556_s20 }
  0x66   : > { %2218 = dma.done.wait (%p3750_p0), %s210_s24, 128  }
  0x67   : > { %2220 = vsyncadd (%p3750_p0), %s210_s24, 4294967168  ;;  %s218_s28 = sand.u32 1, %s2247_s16   ;;  %p3751_p11 = scmp.ne.s32.totalorder %s3742_s27, 0 }
  0x68   : > { %s1485_s10 = sshll.u32 %s218_s28, 9  ;;  %s219_s14 = scalar_lea.sflag [#allocation6], %s218_s28 }
  0x69   : > { %s2564_s15 = scalar_lea.vmem [#allocation5], %s1485_s10 }
  0x6a   : > { %2222 = dma.done.wait (%p3751_p11), %s219_s14, 8192  }
  0x6b   : > { %2224 = vsyncadd (%p3751_p11), %s219_s14, 4294959104  ;;  %s250_s18 = sand.u32 1, %s2235_s13   ;;  %p254_p1 = scmp.lt.s32.totalorder %s2267_s21, 1 }
  0x6c   : > { %s1486_s8 = sshll.u32 %s250_s18, 5  ;;  %p1487_p4 = scmp.ne.s32.totalorder %s2267_s21, 0 }
  0x6d   : > { %s255_s5 = scalar_select %p254_p1, %s2267_s21, 1 }
  0x6e   : > { %s2578_s4 = scalar_lea.vmem [#allocation7], %s1486_s8  ;;  %261 = sbr.rel (%p1487_p4) target bundleno = 117 (0x75), region = 44  ;;  %v2290_v0 = vmov (!%p1487_p4), 0.0  }
  0x6f   : > { %s256_s29 = scalar_lea.vmem %s3721_s2, %s255_s5  ;;  %262 = vst [vmem:[%s2578_s4] sm:$0xff] (!%p1487_p4), %v2290_v0  ;;  %263 = vst [vmem:[%s2578_s4 + $0x8] sm:$0xff] (!%p1487_p4), %v2290_v0 }
  0x70   : > { %264 = vst [vmem:[%s2578_s4 + $0x10] sm:$0xff] (!%p1487_p4), %v2290_v0  ;;  %265 = vst [vmem:[%s2578_s4 + $0x18] sm:$0xff] (!%p1487_p4), %v2290_v0 }
  0x75 PF: > { %v2586_v1 = vld [vmem:[%s2564_s15 + $0x88] sm:$0xff]  ;;  %v2589_v2 = vld [vmem:[%s2564_s15 + $0x80] sm:$0xff]  ;;  %v2598_v6 = vld [vmem:[%s256_s29] sm:$0x1]  ;;  %vm1170_vm0 = vcmask 1040384   ;;  %s1494_s21 = sshll.u32 %s2271_s22, 9 }
  0x76   : > { %v2592_v3 = vld [vmem:[%s2564_s15 + $0x180] sm:$0xff]  ;;  %v348_v4 = vmul.f32 %v2586_v1, %v2586_v1  ;;  %v347_v5 = vmul.f32 %v2589_v2, %v2589_v2  ;;  %v1169_v7 = vmul.f32 %v2598_v6, %v2598_v6  ;;  %v2605_v10 = vld [vmem:[%s2564_s15 + $0x188] sm:$0xff]  ;;  %v2609_v11 = vld [vmem:[%s213_s11] sm:$0xff]  ;;  %s1358_s27 = sshll.u32 %s2578_s4, 4  ;;  %s3638_s24 = scalar_lea.hbm %s3722_s3, %s1494_s21  ;;  %s3640_s27 = int_to_ptr.vmem [resolvable:$true] %s1358_s27 }
  0x77   : > { %v379_v8 = vmul.f32 %v2592_v3, %v2592_v3  ;;  %v380_v12 = vmul.f32 %v2605_v10, %v2605_v10  ;;  %v1163_v13 = vmul.f32 %v2609_v11, %v2609_v11  ;;  %v2616_v14 = vld [vmem:[%s2564_s15] sm:$0xff]  ;;  %v2619_v15 = vld [vmem:[%s2564_s15 + $0x8] sm:$0xff]  ;;  %v2632_v22 = vld [vmem:[%s2564_s15 + $0x90] sm:$0xff]  ;;  %s1344_s11 = scalar_lea.sflag [#allocation4], %s250_s18  ;;  %s2133_s22 = scalar_lea.vmem %s3640_s27, 512 }
  0x78   : > { %429 = vadd.xlane.f32.xlu1 %v348_v4  ;;  %427 = vadd.xlane.f32.xlu0 %v347_v5  ;;  %v1171_v9 = vsel %vm1170_vm0, %v1169_v7, 0.0  ;;  %v331_v16 = vmul.f32 %v2616_v14, %v2616_v14  ;;  %v332_v17 = vmul.f32 %v2619_v15, %v2619_v15  ;;  %v2626_v18 = vld [vmem:[%s2564_s15 + $0x100] sm:$0xff]  ;;  %v300_v19 = vld [vmem:[%s2564_s15 + $0x108] sm:$0xff]  ;;  %v2635_v23 = vld [vmem:[%s2564_s15 + $0x98] sm:$0xff]  ;;  %v349_v24 = vmul.f32 %v2632_v22, %v2632_v22  ;;  %p2134_p13 = scmp.ne.s32.totalorder %s3640_s27, %s2133_s22  ;;  %p3752_p5 = scmp.ne.s32.totalorder %s3745_s9, 0 }
  0x79   : > { %v363_v20 = vmul.f32 %v2626_v18, %v2626_v18  ;;  %v364_v21 = vmul.f32 %v300_v19, %v300_v19  ;;  %v350_v25 = vmul.f32 %v2635_v23, %v2635_v23  ;;  %v2642_v26 = vld [vmem:[%s2564_s15 + $0x190] sm:$0xff]  ;;  %v2645_v27 = vld [vmem:[%s2564_s15 + $0x198] sm:$0xff]  ;;  %v287_v38 = vld [vmem:[%s2564_s15 + $0xa0] sm:$0xff]  ;;  %s2291_s28 = smov [#allocation7]  }
  0x7a   : > { %v381_v28 = vmul.f32 %v2642_v26, %v2642_v26  ;;  %v382_v29 = vmul.f32 %v2645_v27, %v2645_v27  ;;  %v2652_v30 = vld [vmem:[%s2564_s15 + $0x10] sm:$0xff]  ;;  %v2655_v31 = vld [vmem:[%s2564_s15 + $0x18] sm:$0xff]  ;;  %v288_v39 = vld [vmem:[%s2564_s15 + $0xa8] sm:$0xff]  ;;  %v351_v40 = vmul.f32 %v287_v38, %v287_v38  ;;  %p2135_p2 = pnand %p2134_p13, %p3752_p5  ;;  %s2137_s10 = sshll.u32 %s2291_s28, 4  ;;  %s2138_s10 = int_to_ptr.vmem [resolvable:$false] %s2137_s10 }
  0x7b   : > { %v333_v32 = vmul.f32 %v2652_v30, %v2652_v30  ;;  %v334_v33 = vmul.f32 %v2655_v31, %v2655_v31  ;;  %v301_v34 = vld [vmem:[%s2564_s15 + $0x110] sm:$0xff]  ;;  %v302_v35 = vld [vmem:[%s2564_s15 + $0x118] sm:$0xff]  ;;  %v352_v41 = vmul.f32 %v288_v39, %v288_v39  ;;  %v319_v42 = vld [vmem:[%s2564_s15 + $0x1a0] sm:$0xff]  ;;  %s2139_s14 = scalar_lea.vmem %s2138_s10, 1024  ;;  %p2140_p9 = scmp.lt.s32.totalorder %s3640_s27, %s2138_s10 }
  0x7c   : > { %491 = vadd.xlane.f32.xlu1 %v379_v8  ;;  %1172 = vadd.xlane.f32.xlu0 %v1171_v9  ;;  %v365_v36 = vmul.f32 %v301_v34, %v301_v34  ;;  %v366_v37 = vmul.f32 %v302_v35, %v302_v35  ;;  %v320_v43 = vld [vmem:[%s2564_s15 + $0x1a8] sm:$0xff]  ;;  %v383_v44 = vmul.f32 %v319_v42, %v319_v42  ;;  %v271_v46 = vld [vmem:[%s2564_s15 + $0x20] sm:$0xff]  ;;  %v289_v54 = vld [vmem:[%s2564_s15 + $0xb0] sm:$0xff]  ;;  %p2136_p6 = pneg %p2135_p2  ;;  %p2141_p8 = scmp.lt.s32.totalorder %s2139_s14, %s2133_s22 }
  0x7d   : > { %v384_v45 = vmul.f32 %v320_v43, %v320_v43  ;;  %v272_v47 = vld [vmem:[%s2564_s15 + $0x28] sm:$0xff]  ;;  %v335_v48 = vmul.f32 %v271_v46, %v271_v46  ;;  %v303_v50 = vld [vmem:[%s2564_s15 + $0x120] sm:$0xff]  ;;  %v290_v55 = vld [vmem:[%s2564_s15 + $0xb8] sm:$0xff]  ;;  %v353_v56 = vmul.f32 %v289_v54, %v289_v54 }
  0x7e   : > { %v336_v49 = vmul.f32 %v272_v47, %v272_v47  ;;  %v304_v51 = vld [vmem:[%s2564_s15 + $0x128] sm:$0xff]  ;;  %v367_v52 = vmul.f32 %v303_v50, %v303_v50  ;;  %v354_v57 = vmul.f32 %v290_v55, %v290_v55  ;;  %v321_v58 = vld [vmem:[%s2564_s15 + $0x1b0] sm:$0xff]  ;;  %v322_v59 = vld [vmem:[%s2564_s15 + $0x1b8] sm:$0xff]  ;;  %p2142_p10 = por %p2141_p8, %p2140_p9 }
  0x7f   : > { %v368_v53 = vmul.f32 %v304_v51, %v304_v51  ;;  %v385_v60 = vmul.f32 %v321_v58, %v321_v58  ;;  %v386_v61 = vmul.f32 %v322_v59, %v322_v59  ;;  %v273_v62 = vld [vmem:[%s2564_s15 + $0x30] sm:$0xff]  ;;  %v274_v63 = vld [vmem:[%s2564_s15 + $0x38] sm:$0xff]  ;;  %v323_v19 = vld [vmem:[%s2564_s15 + $0x1c0] sm:$0xff] }
  0x80   : > { %493 = vadd.xlane.f32.xlu0 %v380_v12  ;;  %1164 = vadd.xlane.f32.xlu1 %v1163_v13  ;;  %v337_v0 = vmul.f32 %v273_v62, %v273_v62  ;;  %v338_v4 = vmul.f32 %v274_v63, %v274_v63  ;;  %v305_v5 = vld [vmem:[%s2564_s15 + $0x130] sm:$0xff]  ;;  %v306_v7 = vld [vmem:[%s2564_s15 + $0x138] sm:$0xff]  ;;  %v291_v12 = vld [vmem:[%s2564_s15 + $0xc0] sm:$0xff]  ;;  %p2143_p7 = pnand %p2142_p10, %p2136_p6 }
  0x81   : > { %v369_v8 = vmul.f32 %v305_v5, %v305_v5  ;;  %v370_v9 = vmul.f32 %v306_v7, %v306_v7  ;;  %v292_v13 = vld [vmem:[%s2564_s15 + $0xc8] sm:$0xff]  ;;  %v294_v38 = vld [vmem:[%s2564_s15 + $0xd8] sm:$0xff] }
  0x82   : > { %v308_v34 = vld [vmem:[%s2564_s15 + $0x148] sm:$0xff]  ;;  %v326_v42 = vld [vmem:[%s2564_s15 + $0x1d8] sm:$0xff] }
  0x83   : > { %v278_v46 = vld [vmem:[%s2564_s15 + $0x58] sm:$0xff]  ;;  %v296_v54 = vld [vmem:[%s2564_s15 + $0xe8] sm:$0xff] }
  0x84   : > { %395 = vadd.xlane.f32.xlu0 %v331_v16  ;;  %397 = vadd.xlane.f32.xlu1 %v332_v17  ;;  %v355_v16 = vmul.f32 %v291_v12, %v291_v12  ;;  %v356_v17 = vmul.f32 %v292_v13, %v292_v13  ;;  %v310_v50 = vld [vmem:[%s2564_s15 + $0x158] sm:$0xff]  ;;  %v328_v58 = vld [vmem:[%s2564_s15 + $0x1e8] sm:$0xff] }
  0x85   : > { %v280_v62 = vld [vmem:[%s2564_s15 + $0x68] sm:$0xff]  ;;  %v298_v12 = vld [vmem:[%s2564_s15 + $0xf8] sm:$0xff] }
  0x86   : > { %v312_v5 = vld [vmem:[%s2564_s15 + $0x168] sm:$0xff] }
  0x88   : > { %459 = vadd.xlane.f32.xlu0 %v363_v20  ;;  %461 = vadd.xlane.f32.xlu1 %v364_v21  ;;  %v324_v20 = vld [vmem:[%s2564_s15 + $0x1c8] sm:$0xff]  ;;  %v387_v21 = vmul.f32 %v323_v19, %v323_v19  ;;  %v330_v19 = vld [vmem:[%s2564_s15 + $0x1f8] sm:$0xff] }
  0x8c   : > { %431 = vadd.xlane.f32.xlu0 %v349_v24  ;;  %433 = vadd.xlane.f32.xlu1 %v350_v25  ;;  %v388_v24 = vmul.f32 %v324_v20, %v324_v20  ;;  %v275_v25 = vld [vmem:[%s2564_s15 + $0x40] sm:$0xff] }
  0x90   : > { %495 = vadd.xlane.f32.xlu0 %v381_v28  ;;  %497 = vadd.xlane.f32.xlu1 %v382_v29  ;;  %v276_v28 = vld [vmem:[%s2564_s15 + $0x48] sm:$0xff]  ;;  %v339_v29 = vmul.f32 %v275_v25, %v275_v25  ;;  %v282_v25 = vld [vmem:[%s2564_s15 + $0x78] sm:$0xff] }
  0x94   : > { %399 = vadd.xlane.f32.xlu0 %v333_v32  ;;  %401 = vadd.xlane.f32.xlu1 %v334_v33  ;;  %v340_v32 = vmul.f32 %v276_v28, %v276_v28  ;;  %v307_v33 = vld [vmem:[%s2564_s15 + $0x140] sm:$0xff] }
  0x95   : > { %v371_v35 = vmul.f32 %v307_v33, %v307_v33  ;;  %v314_v33 = vld [vmem:[%s2564_s15 + $0x178] sm:$0xff] }
  0x98   : > { %463 = vadd.xlane.f32.xlu0 %v365_v36  ;;  %465 = vadd.xlane.f32.xlu1 %v366_v37  ;;  %v372_v36 = vmul.f32 %v308_v34, %v308_v34  ;;  %v293_v37 = vld [vmem:[%s2564_s15 + $0xd0] sm:$0xff] }
  0x99   : > { %v357_v39 = vmul.f32 %v293_v37, %v293_v37 }
  0x9c   : > { %435 = vadd.xlane.f32.xlu0 %v351_v40  ;;  %437 = vadd.xlane.f32.xlu1 %v352_v41  ;;  %v358_v40 = vmul.f32 %v294_v38, %v294_v38  ;;  %v325_v41 = vld [vmem:[%s2564_s15 + $0x1d0] sm:$0xff] }
  0x9d   : > { %v389_v43 = vmul.f32 %v325_v41, %v325_v41 }
  0xa0   : > { %499 = vadd.xlane.f32.xlu0 %v383_v44  ;;  %501 = vadd.xlane.f32.xlu1 %v384_v45  ;;  %v390_v44 = vmul.f32 %v326_v42, %v326_v42  ;;  %v277_v45 = vld [vmem:[%s2564_s15 + $0x50] sm:$0xff]  ;;  %v1177_v42 = vlaneseq }
  0xa1   : > { %v341_v47 = vmul.f32 %v277_v45, %v277_v45 }
  0xa4   : > { %403 = vadd.xlane.f32.xlu0 %v335_v48  ;;  %405 = vadd.xlane.f32.xlu1 %v336_v49  ;;  %v342_v48 = vmul.f32 %v278_v46, %v278_v46  ;;  %v309_v49 = vld [vmem:[%s2564_s15 + $0x150] sm:$0xff] }
  0xa5   : > { %v373_v51 = vmul.f32 %v309_v49, %v309_v49 }
  0xa8   : > { %467 = vadd.xlane.f32.xlu0 %v367_v52  ;;  %469 = vadd.xlane.f32.xlu1 %v368_v53  ;;  %v374_v52 = vmul.f32 %v310_v50, %v310_v50  ;;  %v295_v53 = vld [vmem:[%s2564_s15 + $0xe0] sm:$0xff] }
  0xa9   : > { %v359_v55 = vmul.f32 %v295_v53, %v295_v53 }
  0xac   : > { %439 = vadd.xlane.f32.xlu0 %v353_v56  ;;  %441 = vadd.xlane.f32.xlu1 %v354_v57  ;;  %v360_v56 = vmul.f32 %v296_v54, %v296_v54  ;;  %v327_v57 = vld [vmem:[%s2564_s15 + $0x1e0] sm:$0xff] }
  0xad   : > { %v391_v59 = vmul.f32 %v327_v57, %v327_v57 }
  0xb0   : > { %503 = vadd.xlane.f32.xlu0 %v385_v60  ;;  %505 = vadd.xlane.f32.xlu1 %v386_v61  ;;  %v392_v60 = vmul.f32 %v328_v58, %v328_v58  ;;  %v279_v61 = vld [vmem:[%s2564_s15 + $0x60] sm:$0xff] }
  0xb1   : > { %v343_v63 = vmul.f32 %v279_v61, %v279_v61 }
  0xb4   : > { %407 = vadd.xlane.f32.xlu0 %v337_v0  ;;  %409 = vadd.xlane.f32.xlu1 %v338_v4  ;;  %v344_v0 = vmul.f32 %v280_v62, %v280_v62  ;;  %v311_v4 = vld [vmem:[%s2564_s15 + $0x160] sm:$0xff] }
  0xb5   : > { %v375_v7 = vmul.f32 %v311_v4, %v311_v4 }
  0xb8   : > { %471 = vadd.xlane.f32.xlu0 %v369_v8  ;;  %473 = vadd.xlane.f32.xlu1 %v370_v9  ;;  %v376_v8 = vmul.f32 %v312_v5, %v312_v5  ;;  %v297_v9 = vld [vmem:[%s2564_s15 + $0xf0] sm:$0xff] }
  0xb9   : > { %v361_v13 = vmul.f32 %v297_v9, %v297_v9 }
  0xbc   : > { %443 = vadd.xlane.f32.xlu0 %v355_v16  ;;  %445 = vadd.xlane.f32.xlu1 %v356_v17  ;;  %v362_v16 = vmul.f32 %v298_v12, %v298_v12  ;;  %v329_v17 = vld [vmem:[%s2564_s15 + $0x1f0] sm:$0xff] }
  0xbd   : > { %v393_v20 = vmul.f32 %v329_v17, %v329_v17 }
  0xc0   : > { %507 = vadd.xlane.f32.xlu0 %v387_v21  ;;  %509 = vadd.xlane.f32.xlu1 %v388_v24  ;;  %v394_v21 = vmul.f32 %v330_v19, %v330_v19  ;;  %v281_v24 = vld [vmem:[%s2564_s15 + $0x70] sm:$0xff] }
  0xc1   : > { %v345_v28 = vmul.f32 %v281_v24, %v281_v24 }
  0xc4   : > { %411 = vadd.xlane.f32.xlu0 %v339_v29  ;;  %413 = vadd.xlane.f32.xlu1 %v340_v32  ;;  %v346_v29 = vmul.f32 %v282_v25, %v282_v25  ;;  %v313_v32 = vld [vmem:[%s2564_s15 + $0x170] sm:$0xff] }
  0xc5   : > { %v377_v34 = vmul.f32 %v313_v32, %v313_v32 }
  0xc8   : > { %475 = vadd.xlane.f32.xlu0 %v371_v35  ;;  %477 = vadd.xlane.f32.xlu1 %v372_v36  ;;  %v378_v35 = vmul.f32 %v314_v33, %v314_v33 }
  0xcc   : > { %447 = vadd.xlane.f32.xlu0 %v357_v39  ;;  %449 = vadd.xlane.f32.xlu1 %v358_v40 }
  0xd0   : > { %511 = vadd.xlane.f32.xlu0 %v389_v43  ;;  %513 = vadd.xlane.f32.xlu1 %v390_v44 }
  0xd4   : > { %415 = vadd.xlane.f32.xlu0 %v341_v47  ;;  %417 = vadd.xlane.f32.xlu1 %v342_v48 }
  0xd8   : > { %479 = vadd.xlane.f32.xlu0 %v373_v51  ;;  %481 = vadd.xlane.f32.xlu1 %v374_v52  ;;  %v1178_v51 = vshrl.u32 %v1177_v42, 7 }
  0xda   : > { %v1179_v61 = vsub.s32 0, %v1178_v51 }
  0xdc   : > { %451 = vadd.xlane.f32.xlu0 %v359_v55  ;;  %453 = vadd.xlane.f32.xlu1 %v360_v56 }
  0xe0   : > { %515 = vadd.xlane.f32.xlu0 %v391_v59  ;;  %517 = vadd.xlane.f32.xlu1 %v392_v60 }
  0xe4   : > { %419 = vadd.xlane.f32.xlu0 %v343_v63  ;;  %421 = vadd.xlane.f32.xlu1 %v344_v0 }
  0xe8   : > { %483 = vadd.xlane.f32.xlu0 %v375_v7  ;;  %485 = vadd.xlane.f32.xlu1 %v376_v8 }
  0xec   : > { %455 = vadd.xlane.f32.xlu0 %v361_v13  ;;  %457 = vadd.xlane.f32.xlu1 %v362_v16 }
  0xf0   : > { %519 = vadd.xlane.f32.xlu0 %v393_v20  ;;  %521 = vadd.xlane.f32.xlu1 %v394_v21 }
  0xf4   : > { %423 = vadd.xlane.f32.xlu0 %v345_v28  ;;  %425 = vadd.xlane.f32.xlu1 %v346_v29 }
  0xf8   : > { %487 = vadd.xlane.f32.xlu0 %v377_v34  ;;  %489 = vadd.xlane.f32.xlu1 %v378_v35 }
 0x105   : > { %v430_v36 = vpop.xlane.xlu1 %429  ;;  %v428_v37 = vpop.xlane.xlu0 %427 }
 0x106   : > { %1762 = vrsqrt.f32 %v430_v36  ;;  %vm644_vm1 = vcmp.eq.f32.partialorder %v430_v36, inf  ;;  %v647_v50 = vand.u32 2147483648, %v430_v36  ;;  %vm637_vm2 = vcmp.eq.f32.partialorder %v428_v37, inf }
 0x107   : > { %1764 = vrsqrt.f32 %v428_v37  ;;  %vm646_vm3 = vcmp.eq.f32.partialorder %v430_v36, 0.0  ;;  %v640_v53 = vand.u32 2147483648, %v428_v37  ;;  %vm639_vm4 = vcmp.eq.f32.partialorder %v428_v37, 0.0 }
 0x109   : > { %v2711_v38 = vpop.xlane.xlu1 %491  ;;  %v1173_v39 = vpop.xlane.xlu0 %1172 }
 0x10a   : > { %1766 = vrsqrt.f32 %v1173_v39  ;;  %vm861_vm5 = vcmp.eq.f32.partialorder %v2711_v38, inf  ;;  %vm863_vm6 = vcmp.eq.f32.partialorder %v2711_v38, 0.0 }
 0x10b   : > { %1768 = vrsqrt.f32 %v2711_v38 }
 0x10d   : > { %v2714_v40 = vpop.xlane.xlu0 %493  ;;  %v1165_v41 = vpop.xlane.xlu1 %1164 }
 0x10e   : > { %1770 = vrsqrt.f32 %v1165_v41  ;;  %vm868_vm7 = vcmp.eq.f32.partialorder %v2714_v40, inf  ;;  %vm870_vm8 = vcmp.eq.f32.partialorder %v2714_v40, 0.0  ;;  %v871_v17 = vand.u32 2147483648, %v2714_v40 }
 0x10f   : > { %1772 = vrsqrt.f32 %v2714_v40 }
 0x110   : > { %v1763_v43 = vpop.eup %1762 }
 0x111   : > { %v1765_v44 = vpop.eup %1764  ;;  %v643_v45 = vmul.f32 %v1763_v43, %v430_v36  ;;  %v2717_v46 = vpop.xlane.xlu0 %395 }
 0x112   : > { %v2719_v47 = vpop.xlane.xlu1 %397  ;;  %v636_v48 = vmul.f32 %v1765_v44, %v428_v37  ;;  %1774 = vrsqrt.f32 %v2717_v46  ;;  %vm525_vm9 = vcmp.eq.f32.partialorder %v2717_v46, inf  ;;  %vm527_vm10 = vcmp.eq.f32.partialorder %v2717_v46, 0.0 }
 0x113   : > { %v645_v49 = vsel %vm644_vm1, %v430_v36, %v643_v45  ;;  %1776 = vrsqrt.f32 %v2719_v47  ;;  %v528_v25 = vand.u32 2147483648, %v2717_v46  ;;  %vm532_vm11 = vcmp.eq.f32.partialorder %v2719_v47, inf }
 0x114   : > { %v638_v52 = vsel %vm637_vm2, %v428_v37, %v636_v48  ;;  %v1767_v54 = vpop.eup %1766  ;;  %v648_v57 = vsel %vm646_vm3, %v647_v50, %v645_v49  ;;  %vm534_vm12 = vcmp.eq.f32.partialorder %v2719_v47, 0.0  ;;  %v535_v29 = vand.u32 2147483648, %v2719_v47 }
 0x115   : > { %v2723_v55 = vpop.xlane.xlu0 %459  ;;  %v641_v58 = vsel %vm639_vm4, %v640_v53, %v638_v52  ;;  %v1769_v59 = vpop.eup %1768  ;;  %v1175_v60 = vmul.f32 %v1767_v54, %v2598_v6  ;;  %v988_v62 = vadd.f32 0.03125, %v648_v57  ;;  %v864_v6 = vand.u32 2147483648, %v2711_v38 }
 0x116   : > { %v2725_v56 = vpop.xlane.xlu1 %461  ;;  %1778 = vrsqrt.f32 %v2723_v55  ;;  %v987_v5 = vadd.f32 0.03125, %v641_v58  ;;  %v860_v8 = vmul.f32 %v1769_v59, %v2711_v38  ;;  %v752_v32 = vand.u32 2147483648, %v2723_v55 }
 0x117   : > { %1780 = vrsqrt.f32 %v2725_v56  ;;  %v2744_v13 = vrot.slane %v1175_v60, %v1179_v61  ;;  %vm749_vm13 = vcmp.eq.f32.partialorder %v2723_v55, inf  ;;  %v759_v35 = vand.u32 2147483648, %v2725_v56 }
 0x118   : > { %v1771_v63 = vpop.eup %1770 }
 0x119   : > { %v2730_v0 = vpop.xlane.xlu0 %431  ;;  %v1773_v7 = vpop.eup %1772  ;;  %v2742_v12 = vmul.f32 %v1771_v63, %v2609_v11  ;;  %v862_v11 = vsel %vm861_vm5, %v2711_v38, %v860_v8 }
 0x11a   : > { %v2732_v4 = vpop.xlane.xlu1 %433  ;;  %1782 = vrsqrt.f32 %v2730_v0  ;;  %v867_v16 = vmul.f32 %v1773_v7, %v2714_v40  ;;  %v865_v39 = vsel %vm863_vm6, %v864_v6, %v862_v11  ;;  %vm651_vm14 = vcmp.eq.f32.partialorder %v2730_v0, inf }
 0x11b   : > { %1784 = vrsqrt.f32 %v2732_v4  ;;  %v1182_v28 = vmul.f32 %v2744_v13, %v2742_v12  ;;  %vm653_vm15 = vcmp.eq.f32.partialorder %v2730_v0, 0.0  ;;  %v654_v42 = vand.u32 2147483648, %v2730_v0 }
 0x11c   : > { %v1775_v9 = vpop.eup %1774  ;;  %1786 = vrcp.f32 %v988_v62  ;;  %v869_v33 = vsel %vm868_vm7, %v2714_v40, %v867_v16  ;;  %vm658_vm0 = vcmp.eq.f32.partialorder %v2732_v4, inf  ;;  %vm660_vm1 = vcmp.eq.f32.partialorder %v2732_v4, 0.0 }
 0x11d   : > { %v2749_v19 = vpop.xlane.xlu0 %495  ;;  %1788 = vrcp.f32 %v987_v5  ;;  %v1777_v21 = vpop.eup %1776  ;;  %v524_v24 = vmul.f32 %v1775_v9, %v2717_v46  ;;  %1183 = vadd.xlane.f32.xlu0 %v1182_v28  ;;  %v661_v45 = vand.u32 2147483648, %v2732_v4  ;;  %v2794_v48 = vsel %vm870_vm8, %v871_v17, %v869_v33 }
 0x11e   : > { %v2751_v20 = vpop.xlane.xlu1 %497  ;;  %1790 = vrsqrt.f32 %v2749_v19  ;;  %v531_v34 = vmul.f32 %v1777_v21, %v2719_v47  ;;  %vm875_vm2 = vcmp.eq.f32.partialorder %v2749_v19, inf  ;;  %v2796_v49 = vadd.f32 0.03125, %v865_v39 }
 0x11f   : > { %1792 = vrsqrt.f32 %v2751_v20  ;;  %v526_v44 = vsel %vm525_vm9, %v2717_v46, %v524_v24  ;;  %vm877_vm3 = vcmp.eq.f32.partialorder %v2749_v19, 0.0  ;;  %v878_v53 = vand.u32 2147483648, %v2749_v19 }
 0x120   : > { %v1779_v41 = vpop.eup %1778  ;;  %v533_v51 = vsel %vm532_vm11, %v2719_v47, %v531_v34  ;;  %v2810_v58 = vsel %vm527_vm10, %v528_v25, %v526_v44  ;;  %vm882_vm4 = vcmp.eq.f32.partialorder %v2751_v20, inf  ;;  %vm884_vm5 = vcmp.eq.f32.partialorder %v2751_v20, 0.0 }
 0x121   : > { %v2774_v36 = vpop.xlane.xlu0 %399  ;;  %v1781_v43 = vpop.eup %1780  ;;  %v748_v59 = vmul.f32 %v1779_v41, %v2723_v55  ;;  %v2823_v63 = vsel %vm534_vm12, %v535_v29, %v533_v51  ;;  %v885_v8 = vand.u32 2147483648, %v2751_v20  ;;  %vm756_vm7 = vcmp.eq.f32.partialorder %v2725_v56, inf }
 0x122   : > { %v2776_v37 = vpop.xlane.xlu1 %401  ;;  %1794 = vrsqrt.f32 %v2774_v36  ;;  %v755_v9 = vmul.f32 %v1781_v43, %v2725_v56  ;;  %vm539_vm6 = vcmp.eq.f32.partialorder %v2774_v36, inf  ;;  %vm541_vm8 = vcmp.eq.f32.partialorder %v2774_v36, 0.0 }
 0x123   : > { %1796 = vrsqrt.f32 %v2776_v37  ;;  %v2843_v21 = vsel %vm749_vm13, %v2723_v55, %v748_v59  ;;  %v542_v29 = vand.u32 2147483648, %v2774_v36  ;;  %vm546_vm9 = vcmp.eq.f32.partialorder %v2776_v37, inf }
 0x124   : > { %v1783_v38 = vpop.eup %1782  ;;  %vm751_vm10 = vcmp.eq.f32.partialorder %v2723_v55, 0.0  ;;  %vm758_vm11 = vcmp.eq.f32.partialorder %v2725_v56, 0.0  ;;  %vm548_vm12 = vcmp.eq.f32.partialorder %v2776_v37, 0.0  ;;  %v549_v51 = vand.u32 2147483648, %v2776_v37 }
 0x125   : > { %v1785_v50 = vpop.eup %1784  ;;  %v650_v52 = vmul.f32 %v1783_v38, %v2730_v0  ;;  %v2804_v54 = vpop.xlane.xlu0 %463 }
 0x126   : > { %v2806_v57 = vpop.xlane.xlu1 %465  ;;  %v1787_v40 = vpop.eup %1786  ;;  %v657_v60 = vmul.f32 %v1785_v50, %v2732_v4  ;;  %1798 = vrsqrt.f32 %v2804_v54  ;;  %vm763_vm13 = vcmp.eq.f32.partialorder %v2804_v54, inf }
 0x127   : > { %v1789_v61 = vpop.eup %1788  ;;  %v652_v62 = vsel %vm651_vm14, %v2730_v0, %v650_v52  ;;  %1800 = vrsqrt.f32 %v2806_v57  ;;  %vm765_vm14 = vcmp.eq.f32.partialorder %v2804_v54, 0.0 }
 0x128   : > { %v1791_v46 = vpop.eup %1790  ;;  %v655_v5 = vsel %vm653_vm15, %v654_v42, %v652_v62  ;;  %v659_v7 = vsel %vm658_vm0, %v2732_v4, %v657_v60  ;;  %v1068_v24 = vmul.f32 %v1789_v61, %v2589_v2  ;;  %v1070_v4 = vmul.f32 %v1787_v40, %v2586_v1 }
 0x129   : > { %v1793_v6 = vpop.eup %1792  ;;  %v662_v16 = vsel %vm660_vm1, %v661_v45, %v659_v7  ;;  %v874_v17 = vmul.f32 %v1791_v46, %v2749_v19  ;;  %v2836_v47 = vpop.xlane.xlu0 %435  ;;  %v989_v25 = vadd.f32 0.03125, %v655_v5  ;;  %v766_v7 = vand.u32 2147483648, %v2804_v54 }
 0x12a   : > { %v2838_v0 = vpop.xlane.xlu1 %437  ;;  %v881_v11 = vmul.f32 %v1793_v6, %v2751_v20  ;;  %v990_v34 = vadd.f32 0.03125, %v662_v16  ;;  %v1563_v2 = vpack.c.bf16 %v1070_v4, %v1068_v24  ;;  %1802 = vrsqrt.f32 %v2836_v47 }
 0x12b   : > { %v876_v28 = vsel %vm875_vm2, %v2749_v19, %v874_v17  ;;  %1804 = vrsqrt.f32 %v2838_v0  ;;  %vm770_vm15 = vcmp.eq.f32.partialorder %v2806_v57, inf  ;;  %v757_v6 = vsel %vm756_vm7, %v2725_v56, %v755_v9 }
 0x12c   : > { %v1795_v33 = vpop.eup %1794  ;;  %v879_v39 = vsel %vm877_vm3, %v878_v53, %v876_v28  ;;  %v883_v1 = vsel %vm882_vm4, %v2751_v20, %v881_v11  ;;  %1564 = vmatprep.subr.bf16.mxu0 %v1563_v2  ;;  %1806 = vrcp.f32 %v989_v25  ;;  %v971_v11 = vadd.f32 0.03125, %v2810_v58 }
 0x12d   : > { %v1797_v41 = vpop.eup %1796  ;;  %v886_v42 = vsel %vm884_vm5, %v885_v8, %v883_v1  ;;  %v538_v43 = vmul.f32 %v1795_v33, %v2774_v36  ;;  %v2864_v44 = vpop.xlane.xlu0 %499  ;;  %v1021_v19 = vadd.f32 0.03125, %v879_v39  ;;  %1808 = vrcp.f32 %v990_v34 }
 0x12e   : > { %v2866_v38 = vpop.xlane.xlu1 %501  ;;  %v545_v45 = vmul.f32 %v1797_v41, %v2776_v37  ;;  %v1022_v20 = vadd.f32 0.03125, %v886_v42  ;;  %1810 = vrsqrt.f32 %v2864_v44  ;;  %v773_v4 = vand.u32 2147483648, %v2806_v57 }
 0x12f   : > { %v540_v50 = vsel %vm539_vm6, %v2774_v36, %v538_v43  ;;  %1812 = vrcp.f32 %v1021_v19  ;;  %v972_v28 = vadd.f32 0.03125, %v2823_v63  ;;  %vm772_vm0 = vcmp.eq.f32.partialorder %v2806_v57, 0.0 }
 0x130   : > { %v1799_v52 = vpop.eup %1798  ;;  %v543_v53 = vsel %vm541_vm8, %v542_v29, %v540_v50  ;;  %v547_v40 = vsel %vm546_vm9, %v2776_v37, %v545_v45  ;;  %1814 = vrcp.f32 %v1022_v20  ;;  %v1020_v9 = vadd.f32 0.03125, %v2794_v48 }
 0x131   : > { %v1801_v59 = vpop.eup %1800  ;;  %v973_v60 = vadd.f32 0.03125, %v543_v53  ;;  %v550_v61 = vsel %vm548_vm12, %v549_v51, %v547_v40  ;;  %v762_v62 = vmul.f32 %v1799_v52, %v2804_v54  ;;  %v2885_v46 = vpop.xlane.xlu0 %403  ;;  %v753_v58 = vsel %vm751_vm10, %v752_v32, %v2843_v21 }
 0x132   : > { %v2887_v5 = vpop.xlane.xlu1 %405  ;;  %v974_v36 = vadd.f32 0.03125, %v550_v61  ;;  %v769_v8 = vmul.f32 %v1801_v59, %v2806_v57  ;;  %v760_v33 = vsel %vm758_vm11, %v759_v35, %v757_v6  ;;  %vm665_vm1 = vcmp.eq.f32.partialorder %v2836_v47, inf }
 0x133   : > { %v764_v37 = vsel %vm763_vm13, %v2804_v54, %v762_v62  ;;  %1816 = vrcp.f32 %v973_v60  ;;  %vm667_vm2 = vcmp.eq.f32.partialorder %v2836_v47, 0.0  ;;  %v668_v55 = vand.u32 2147483648, %v2836_v47 }
 0x134   : > { %v767_v16 = vsel %vm765_vm14, %v766_v7, %v764_v37  ;;  %v771_v17 = vsel %vm770_vm15, %v2806_v57, %v769_v8  ;;  %1818 = vrsqrt.f32 %v2866_v38  ;;  %v1803_v29 = vpop.eup %1802  ;;  %vm672_vm3 = vcmp.eq.f32.partialorder %v2838_v0, inf }
 0x135   : > { %v1005_v24 = vadd.f32 0.03125, %v767_v16  ;;  %v2901_v25 = vpop.xlane.xlu0 %467  ;;  %1820 = vrcp.f32 %v974_v36  ;;  %v774_v34 = vsel %vm772_vm0, %v773_v4, %v771_v17  ;;  %v1805_v63 = vpop.eup %1804  ;;  %v664_v57 = vmul.f32 %v1803_v29, %v2836_v47 }
 0x136   : > { %v2903_v54 = vpop.xlane.xlu1 %469  ;;  %1822 = vrcp.f32 %v2796_v49  ;;  %v2921_v48 = vpop.eup %1806  ;;  %v671_v32 = vmul.f32 %v1805_v63, %v2838_v0  ;;  %v1006_v21 = vadd.f32 0.03125, %v774_v34  ;;  %v675_v1 = vand.u32 2147483648, %v2838_v0 }
 0x137   : > { %1824 = vrcp.f32 %v1005_v24  ;;  %v2930_v49 = vpop.eup %1808  ;;  %v666_v39 = vsel %vm665_vm1, %v2836_v47, %v664_v57  ;;  %vm674_vm4 = vcmp.eq.f32.partialorder %v2838_v0, 0.0  ;;  %v1003_v50 = vadd.f32 0.03125, %v753_v58 }
 0x138   : > { %1826 = vrcp.f32 %v1020_v9  ;;  %v1811_v2 = vpop.eup %1810  ;;  %v669_v41 = vsel %vm667_vm2, %v668_v55, %v666_v39  ;;  %v673_v42 = vsel %vm672_vm3, %v2838_v0, %v671_v32  ;;  %vm889_vm5 = vcmp.eq.f32.partialorder %v2864_v44, inf }
 0x139   : > { %v2926_v56 = vpop.xlane.xlu0 %439  ;;  %1828 = vrsqrt.f32 %v2885_v46  ;;  %v2938_v43 = vpop.eup %1812  ;;  %v991_v19 = vadd.f32 0.03125, %v669_v41  ;;  %v676_v45 = vsel %vm674_vm4, %v675_v1, %v673_v42  ;;  %v888_v20 = vmul.f32 %v1811_v2, %v2864_v44 }
 0x13a   : > { %v2928_v35 = vpop.xlane.xlu1 %441  ;;  %1830 = vrsqrt.f32 %v2887_v5  ;;  %v2941_v47 = vpop.eup %1814  ;;  %v892_v51 = vand.u32 2147483648, %v2864_v44  ;;  %v992_v40 = vadd.f32 0.03125, %v676_v45  ;;  %vm891_vm6 = vcmp.eq.f32.partialorder %v2864_v44, 0.0 }
 0x13b   : > { %1832 = vrcp.f32 %v971_v11  ;;  %v890_v59 = vsel %vm889_vm5, %v2864_v44, %v888_v20  ;;  %v1004_v61 = vadd.f32 0.03125, %v760_v33  ;;  %vm896_vm7 = vcmp.eq.f32.partialorder %v2866_v38, inf }
 0x13c   : > { %1834 = vrcp.f32 %v972_v28  ;;  %v893_v62 = vsel %vm891_vm6, %v892_v51, %v890_v59  ;;  %vm898_vm8 = vcmp.eq.f32.partialorder %v2866_v38, 0.0  ;;  %v899_v8 = vand.u32 2147483648, %v2866_v38 }
 0x13d   : > { %v2945_v52 = vpop.xlane.xlu0 %503  ;;  %v2949_v53 = vpop.eup %1816  ;;  %1836 = vrcp.f32 %v1006_v21  ;;  %vm553_vm9 = vcmp.eq.f32.partialorder %v2885_v46, inf  ;;  %vm555_vm10 = vcmp.eq.f32.partialorder %v2885_v46, 0.0  ;;  %v556_v44 = vand.u32 2147483648, %v2885_v46 }
 0x13e   : > { %v2947_v0 = vpop.xlane.xlu1 %505  ;;  %v1819_v60 = vpop.eup %1818  ;;  %1838 = vrcp.f32 %v991_v19  ;;  %v1023_v11 = vadd.f32 0.03125, %v893_v62  ;;  %vm560_vm11 = vcmp.eq.f32.partialorder %v2887_v5, inf  ;;  %vm562_vm12 = vcmp.eq.f32.partialorder %v2887_v5, 0.0 }
 0x13f   : > { %v2954_v36 = vpop.eup %1820  ;;  %v895_v7 = vmul.f32 %v1819_v60, %v2866_v38  ;;  %1840 = vrsqrt.f32 %v2901_v25  ;;  %v563_v28 = vand.u32 2147483648, %v2887_v5  ;;  %v780_v9 = vand.u32 2147483648, %v2901_v25 }
 0x140   : > { %v1823_v37 = vpop.eup %1822  ;;  %1842 = vrsqrt.f32 %v2903_v54  ;;  %vm777_vm13 = vcmp.eq.f32.partialorder %v2901_v25, inf  ;;  %v1072_v34 = vmul.f32 %v2921_v48, %v2632_v22  ;;  %vm779_vm14 = vcmp.eq.f32.partialorder %v2901_v25, 0.0 }
 0x141   : > { %v2964_v6 = vpop.xlane.xlu0 %407  ;;  %v2968_v17 = vpop.eup %1824  ;;  %1844 = vrcp.f32 %v992_v40  ;;  %v897_v24 = vsel %vm896_vm7, %v2866_v38, %v895_v7  ;;  %v1132_v58 = vmul.f32 %v1823_v37, %v2592_v3  ;;  %vm784_vm15 = vcmp.eq.f32.partialorder %v2903_v54, inf }
 0x142   : > { %v2966_v16 = vpop.xlane.xlu1 %409  ;;  %v1827_v4 = vpop.eup %1826  ;;  %1846 = vrcp.f32 %v1003_v50  ;;  %v900_v57 = vsel %vm898_vm8, %v899_v8, %v897_v24  ;;  %v1074_v3 = vmul.f32 %v2930_v49, %v2635_v23  ;;  %vm786_vm0 = vcmp.eq.f32.partialorder %v2903_v54, 0.0 }
 0x143   : > { %v1829_v29 = vpop.eup %1828  ;;  %v1134_v33 = vmul.f32 %v1827_v4, %v2605_v10  ;;  %1848 = vrcp.f32 %v1004_v61  ;;  %v787_v23 = vand.u32 2147483648, %v2903_v54  ;;  %v1024_v2 = vadd.f32 0.03125, %v900_v57 }
 0x144   : > { %v1831_v63 = vpop.eup %1830  ;;  %v552_v55 = vmul.f32 %v1829_v29, %v2885_v46  ;;  %1850 = vrsqrt.f32 %v2926_v56  ;;  %vm679_vm1 = vcmp.eq.f32.partialorder %v2926_v56, inf  ;;  %v682_v45 = vand.u32 2147483648, %v2926_v56 }
 0x145   : > { %v2990_v10 = vpop.xlane.xlu0 %471  ;;  %v1833_v22 = vpop.eup %1832  ;;  %1852 = vrcp.f32 %v1023_v11  ;;  %v1595_v48 = vpack.c.bf16 %v1134_v33, %v1132_v58  ;;  %v559_v38 = vmul.f32 %v1831_v63, %v2887_v5  ;;  %v1567_v20 = vpack.c.bf16 %v1074_v3, %v1072_v34  ;;  %v2022_v34 = vld [vmem:[%s2564_s15 + $0x108] sm:$0xff] }
 0x146   : > { %v2992_v32 = vpop.xlane.xlu1 %473  ;;  %v1835_v21 = vpop.eup %1834  ;;  %v554_v39 = vsel %vm553_vm9, %v2885_v46, %v552_v55  ;;  %v1036_v1 = vmul.f32 %v1833_v22, %v2616_v14  ;;  %1854 = vrsqrt.f32 %v2928_v35  ;;  %vm681_vm2 = vcmp.eq.f32.partialorder %v2926_v56, 0.0 }
 0x147   : > { %v3002_v49 = vpop.eup %1836  ;;  %1596 = vmatprep.subr.bf16.mxu1 %v1595_v48  ;;  %v561_v41 = vsel %vm560_vm11, %v2887_v5, %v559_v38  ;;  %v1038_v42 = vmul.f32 %v1835_v21, %v2619_v15  ;;  %1856 = vrsqrt.f32 %v2945_v52  ;;  %v557_v14 = vsel %vm555_vm10, %v556_v44, %v554_v39 }
 0x148   : > { %v3009_v19 = vpop.eup %1838  ;;  %1858 = vrsqrt.f32 %v2947_v0  ;;  %v564_v15 = vsel %vm562_vm12, %v563_v28, %v561_v41  ;;  %v689_v59 = vand.u32 2147483648, %v2928_v35  ;;  %vm686_vm3 = vcmp.eq.f32.partialorder %v2928_v35, inf }
 0x149   : > { %v3016_v50 = vpop.xlane.xlu0 %443  ;;  %v1841_v51 = vpop.eup %1840  ;;  %v1565_v40 = vpack.c.bf16 %v1038_v42, %v1036_v1  ;;  %1860 = vrsqrt.f32 %v2964_v6  ;;  %v906_v61 = vand.u32 2147483648, %v2945_v52  ;;  %v1136_v62 = vmul.f32 %v2938_v43, %v2642_v26 }
 0x14a   : > { %v1843_v46 = vpop.eup %1842  ;;  %v776_v60 = vmul.f32 %v1841_v51, %v2901_v25  ;;  %v1138_v5 = vmul.f32 %v2941_v47, %v2645_v27  ;;  %v3030_v7 = vpop.xlane.xlu1 %445  ;;  %1862 = vrcp.f32 %v1024_v2  ;;  %v975_v37 = vadd.f32 0.03125, %v557_v14 }
 0x14b   : > { %v3032_v8 = vpop.eup %1844  ;;  %1566 = vmatpush3.bf16.xpose.msra.mxu0 %v1565_v40  ;;  %v783_v44 = vmul.f32 %v1843_v46, %v2903_v54  ;;  %vm688_vm4 = vcmp.eq.f32.partialorder %v2928_v35, 0.0  ;;  %vm903_vm5 = vcmp.eq.f32.partialorder %v2945_v52, inf  ;;  %v913_v11 = vand.u32 2147483648, %v2947_v0 }
 0x14c   : > { %v1847_v24 = vpop.eup %1846  ;;  %v976_v26 = vadd.f32 0.03125, %v564_v15  ;;  %v778_v27 = vsel %vm777_vm13, %v2901_v25, %v776_v60  ;;  %1568 = vmatprep.subr.bf16.mxu0 %v1567_v20  ;;  %vm905_vm6 = vcmp.eq.f32.partialorder %v2945_v52, 0.0  ;;  %vm910_vm7 = vcmp.eq.f32.partialorder %v2947_v0, inf  ;;  %v2023_v15 = vld [vmem:[%s2564_s15 + $0x110] sm:$0xff] }
 0x14d   : > { %1864 = vrsqrt.f32 %v2966_v16  ;;  %v1040_v43 = vmul.f32 %v2949_v53, %v2652_v30  ;;  %v1849_v47 = vpop.eup %1848  ;;  %v781_v4 = vsel %vm779_vm14, %v780_v9, %v778_v27  ;;  %v785_v28 = vsel %vm784_vm15, %v2903_v54, %v783_v44  ;;  %v3057_v33 = vpop.xlane.xlu0 %507  ;;  %v2024_v44 = vld [vmem:[%s2564_s15 + $0x118] sm:$0xff] }
 0x14e   : > { %v1100_v29 = vmul.f32 %v1847_v24, %v2626_v18  ;;  %vm912_vm8 = vcmp.eq.f32.partialorder %v2947_v0, 0.0  ;;  %v1042_v58 = vmul.f32 %v2954_v36, %v2655_v31  ;;  %v1851_v30 = vpop.eup %1850  ;;  %v788_v53 = vsel %vm786_vm0, %v787_v23, %v785_v28  ;;  %v3069_v3 = vpop.xlane.xlu1 %509 }
 0x14f   : > { %v1102_v25 = vmul.f32 %v2022_v34, %v1849_v47  ;;  %v1599_v9 = vpack.c.bf16 %v1138_v5, %v1136_v62  ;;  %1866 = vrsqrt.f32 %v2990_v10  ;;  %v3063_v63 = vpop.eup %1852  ;;  %v1007_v57 = vadd.f32 0.03125, %v781_v4 }
 0x150   : > { %v678_v18 = vmul.f32 %v1851_v30, %v2926_v56  ;;  %vm567_vm9 = vcmp.eq.f32.partialorder %v2964_v6, inf  ;;  %v1569_v55 = vpack.c.bf16 %v1042_v58, %v1040_v43  ;;  %v1855_v31 = vpop.eup %1854  ;;  %1868 = vrcp.f32 %v975_v37 }
 0x151   : > { %v1597_v36 = vpack.c.bf16 %v1102_v25, %v1100_v29  ;;  %vm569_vm10 = vcmp.eq.f32.partialorder %v2964_v6, 0.0  ;;  %v570_v54 = vand.u32 2147483648, %v2964_v6  ;;  %v1857_v22 = vpop.eup %1856  ;;  %1870 = vrcp.f32 %v976_v26 }
 0x152   : > { %v1008_v48 = vadd.f32 0.03125, %v788_v53  ;;  %v680_v38 = vsel %vm679_vm1, %v2926_v56, %v678_v18  ;;  %v685_v21 = vmul.f32 %v1855_v31, %v2928_v35  ;;  %v1859_v39 = vpop.eup %1858  ;;  %v902_v23 = vmul.f32 %v1857_v22, %v2945_v52  ;;  %v3086_v56 = vpop.xlane.xlu0 %411 }
 0x153   : > { %1598 = vmatpush3.bf16.xpose.msra.mxu1 %v1597_v36  ;;  %v683_v1 = vsel %vm681_vm2, %v682_v45, %v680_v38  ;;  %vm574_vm11 = vcmp.eq.f32.partialorder %v2966_v16, inf  ;;  %1872 = vrsqrt.f32 %v2992_v32  ;;  %v1861_v2 = vpop.eup %1860  ;;  %v909_v14 = vmul.f32 %v1859_v39, %v2947_v0  ;;  %1570 = vmatpush3.bf16.xpose.msra.mxu0 %v1569_v55  ;;  %v2026_v36 = vld [vmem:[%s2564_s15 + $0xa8] sm:$0xff] }
 0x154   : > { %1874 = vrcp.f32 %v1007_v57  ;;  %v993_v41 = vadd.f32 0.03125, %v683_v1  ;;  %v687_v42 = vsel %vm686_vm3, %v2928_v35, %v685_v21  ;;  %1600 = vmatprep.subr.bf16.mxu1 %v1599_v9  ;;  %v904_v20 = vsel %vm903_vm5, %v2945_v52, %v902_v23  ;;  %v3098_v46 = vpop.eup %1862  ;;  %v3116_v52 = vpop.xlane.xlu1 %413  ;;  %v2025_v9 = vld [vmem:[%s2564_s15 + $0xa0] sm:$0xff] }
 0x155   : > { %v690_v45 = vsel %vm688_vm4, %v689_v59, %v687_v42  ;;  %v566_v51 = vmul.f32 %v1861_v2, %v2964_v6  ;;  %v1104_v40 = vmul.f32 %v2023_v15, %v2968_v17  ;;  %1876 = vrcp.f32 %v1008_v48  ;;  %v2028_v2 = vld [vmem:[%s2564_s15 + $0x1a8] sm:$0xff] }
 0x156   : > { %v994_v60 = vadd.f32 0.03125, %v690_v45  ;;  %v907_v62 = vsel %vm905_vm6, %v906_v61, %v904_v20  ;;  %v911_v35 = vsel %vm910_vm7, %v2947_v0, %v909_v14  ;;  %v1106_v24 = vmul.f32 %v2024_v44, %v3002_v49 }
 0x157   : > { %v1865_v59 = vpop.eup %1864  ;;  %v1025_v5 = vadd.f32 0.03125, %v907_v62  ;;  %v914_v17 = vsel %vm912_vm8, %v913_v11, %v911_v35  ;;  %v568_v37 = vsel %vm567_vm9, %v2964_v6, %v566_v51  ;;  %1878 = vrcp.f32 %v993_v41  ;;  %v3127_v6 = vpop.xlane.xlu0 %475  ;;  %v2030_v62 = vld [vmem:[%s2564_s15 + $0x28] sm:$0xff] }
 0x158   : > { %v1026_v61 = vadd.f32 0.03125, %v914_v17  ;;  %v571_v26 = vsel %vm569_vm10, %v570_v54, %v568_v37  ;;  %v573_v27 = vmul.f32 %v1865_v59, %v2966_v16  ;;  %1880 = vrcp.f32 %v994_v60  ;;  %v3137_v18 = vpop.xlane.xlu1 %477 }
 0x159   : > { %v1867_v43 = vpop.eup %1866  ;;  %vm576_vm12 = vcmp.eq.f32.partialorder %v2966_v16, 0.0  ;;  %v577_v0 = vand.u32 2147483648, %v2966_v16  ;;  %v1601_v11 = vpack.c.bf16 %v1106_v24, %v1104_v40  ;;  %1882 = vrcp.f32 %v1025_v5 }
 0x15a   : > { %v977_v47 = vadd.f32 0.03125, %v571_v26  ;;  %v575_v49 = vsel %vm574_vm11, %v2966_v16, %v573_v27  ;;  %v790_v4 = vmul.f32 %v1867_v43, %v2990_v10  ;;  %v1869_v28 = vpop.eup %1868  ;;  %1884 = vrcp.f32 %v1026_v61  ;;  %v2031_v43 = vld [vmem:[%s2564_s15 + $0x120] sm:$0xff] }
 0x15b   : > { %v578_v29 = vsel %vm576_vm12, %v577_v0, %v575_v49  ;;  %vm791_vm13 = vcmp.eq.f32.partialorder %v2990_v10, inf  ;;  %v794_v58 = vand.u32 2147483648, %v2990_v10  ;;  %1602 = vmatpush3.bf16.xpose.msra.mxu1 %v1601_v11  ;;  %v1871_v30 = vpop.eup %1870  ;;  %vm793_vm14 = vcmp.eq.f32.partialorder %v2990_v10, 0.0  ;;  %v3150_v21 = vpop.xlane.xlu0 %447  ;;  %v2032_v11 = vld [vmem:[%s2564_s15 + $0x128] sm:$0xff] }
 0x15c   : > { %v978_v53 = vadd.f32 0.03125, %v578_v29  ;;  %v792_v34 = vsel %vm791_vm13, %v2990_v10, %v790_v4  ;;  %1886 = vrsqrt.f32 %v3016_v50  ;;  %v1076_v57 = vmul.f32 %v2025_v9, %v3009_v19  ;;  %v3169_v20 = vpop.xlane.xlu1 %449 }
 0x15d   : > { %v1873_v16 = vpop.eup %1872  ;;  %v795_v25 = vsel %vm793_vm14, %v794_v58, %v792_v34  ;;  %1888 = vrsqrt.f32 %v3030_v7  ;;  %v1078_v54 = vmul.f32 %v2026_v36, %v3032_v8  ;;  %vm798_vm15 = vcmp.eq.f32.partialorder %v2992_v32, inf }
 0x15e   : > { %v3139_v55 = vpop.eup %1874  ;;  %1890 = vrcp.f32 %v977_v47  ;;  %v797_v31 = vmul.f32 %v1873_v16, %v2992_v32  ;;  %vm800_vm0 = vcmp.eq.f32.partialorder %v2992_v32, 0.0  ;;  %v801_v10 = vand.u32 2147483648, %v2992_v32 }
 0x15f   : > { %1892 = vrsqrt.f32 %v3057_v33  ;;  %v1877_v19 = vpop.eup %1876  ;;  %v1009_v22 = vadd.f32 0.03125, %v795_v25  ;;  %vm693_vm1 = vcmp.eq.f32.partialorder %v3016_v50, inf  ;;  %v1571_v38 = vpack.c.bf16 %v1078_v54, %v1076_v57  ;;  %v3185_v17 = vpop.xlane.xlu0 %511 }
 0x160   : > { %1894 = vrcp.f32 %v978_v53  ;;  %v799_v48 = vsel %vm798_vm15, %v2992_v32, %v797_v31  ;;  %vm695_vm2 = vcmp.eq.f32.partialorder %v3016_v50, 0.0  ;;  %v696_v39 = vand.u32 2147483648, %v3016_v50  ;;  %v2027_v32 = vld [vmem:[%s2564_s15 + $0x1a0] sm:$0xff]  ;;  %v3203_v29 = vpop.xlane.xlu1 %513 }
 0x161   : > { %v802_v8 = vsel %vm800_vm0, %v801_v10, %v799_v48  ;;  %vm700_vm3 = vcmp.eq.f32.partialorder %v3030_v7, inf  ;;  %1896 = vrsqrt.f32 %v3069_v3  ;;  %v3156_v1 = vpop.eup %1878  ;;  %vm702_vm4 = vcmp.eq.f32.partialorder %v3030_v7, 0.0  ;;  %1572 = vmatprep.subr.bf16.mxu0 %v1571_v38 }
 0x162   : > { %v1140_v23 = vmul.f32 %v2027_v32, %v3063_v63  ;;  %v1142_v41 = vmul.f32 %v2028_v2, %v3098_v46  ;;  %1898 = vrsqrt.f32 %v3086_v56  ;;  %v3164_v42 = vpop.eup %1880  ;;  %v1010_v14 = vadd.f32 0.03125, %v802_v8  ;;  %v2029_v46 = vld [vmem:[%s2564_s15 + $0x20] sm:$0xff] }
 0x163   : > { %v703_v45 = vand.u32 2147483648, %v3030_v7  ;;  %vm917_vm5 = vcmp.eq.f32.partialorder %v3057_v33, inf  ;;  %1900 = vrsqrt.f32 %v3116_v52  ;;  %v3171_v51 = vpop.eup %1882  ;;  %vm919_vm6 = vcmp.eq.f32.partialorder %v3057_v33, 0.0  ;;  %v3223_v10 = vpop.xlane.xlu0 %415 }
 0x164   : > { %1902 = vrcp.f32 %v1009_v22  ;;  %v920_v63 = vand.u32 2147483648, %v3057_v33  ;;  %v1603_v15 = vpack.c.bf16 %v1142_v41, %v1140_v23  ;;  %v3175_v40 = vpop.eup %1884  ;;  %vm924_vm7 = vcmp.eq.f32.partialorder %v3069_v3, inf  ;;  %v3242_v41 = vpop.xlane.xlu1 %417 }
 0x165   : > { %v1044_v60 = vmul.f32 %v2029_v46, %v1869_v28  ;;  %v1046_v35 = vmul.f32 %v2030_v62, %v1871_v30  ;;  %1904 = vrsqrt.f32 %v3127_v6  ;;  %vm926_vm8 = vcmp.eq.f32.partialorder %v3069_v3, 0.0 }
 0x166   : > { %v1887_v59 = vpop.eup %1886  ;;  %v927_v5 = vand.u32 2147483648, %v3069_v3  ;;  %1604 = vmatprep.subr.bf16.mxu1 %v1603_v15  ;;  %vm581_vm9 = vcmp.eq.f32.partialorder %v3086_v56, inf  ;;  %1906 = vrsqrt.f32 %v3137_v18  ;;  %vm583_vm10 = vcmp.eq.f32.partialorder %v3086_v56, 0.0 }
 0x167   : > { %v1889_v37 = vpop.eup %1888  ;;  %1908 = vrcp.f32 %v1010_v14  ;;  %v692_v44 = vmul.f32 %v1887_v59, %v3016_v50  ;;  %v584_v24 = vand.u32 2147483648, %v3086_v56  ;;  %v1573_v61 = vpack.c.bf16 %v1046_v35, %v1044_v60 }
 0x168   : > { %v3190_v26 = vpop.eup %1890  ;;  %v699_v27 = vmul.f32 %v1889_v37, %v3030_v7  ;;  %vm588_vm11 = vcmp.eq.f32.partialorder %v3116_v52, inf  ;;  %v1108_v0 = vmul.f32 %v2031_v43, %v3139_v55  ;;  %v1110_v47 = vmul.f32 %v2032_v11, %v1877_v19 }
 0x169   : > { %v1893_v49 = vpop.eup %1892  ;;  %v694_v4 = vsel %vm693_vm1, %v3016_v50, %v692_v44  ;;  %vm590_vm12 = vcmp.eq.f32.partialorder %v3116_v52, 0.0  ;;  %v591_v28 = vand.u32 2147483648, %v3116_v52  ;;  %1574 = vmatpush3.bf16.xpose.msra.mxu0 %v1573_v61  ;;  %1910 = vrsqrt.f32 %v3150_v21  ;;  %v3261_v44 = vpop.xlane.xlu0 %479 }
 0x16a   : > { %v3205_v58 = vpop.eup %1894  ;;  %v697_v30 = vsel %vm695_vm2, %v696_v39, %v694_v4  ;;  %v701_v53 = vsel %vm700_vm3, %v3030_v7, %v699_v27  ;;  %v916_v34 = vmul.f32 %v1893_v49, %v3057_v33  ;;  %vm805_vm13 = vcmp.eq.f32.partialorder %v3127_v6, inf  ;;  %v3276_v4 = vpop.xlane.xlu1 %481 }
 0x16b   : > { %v1605_v16 = vpack.c.bf16 %v1110_v47, %v1108_v0  ;;  %v1897_v25 = vpop.eup %1896  ;;  %v995_v9 = vadd.f32 0.03125, %v697_v30  ;;  %v704_v57 = vsel %vm702_vm4, %v703_v45, %v701_v53  ;;  %vm807_vm14 = vcmp.eq.f32.partialorder %v3127_v6, 0.0 }
 0x16c   : > { %1912 = vrsqrt.f32 %v3169_v20  ;;  %v1899_v50 = vpop.eup %1898  ;;  %v996_v55 = vadd.f32 0.03125, %v704_v57  ;;  %v918_v31 = vsel %vm917_vm5, %v3057_v33, %v916_v34  ;;  %v923_v36 = vmul.f32 %v1897_v25, %v3069_v3 }
 0x16d   : > { %v808_v54 = vand.u32 2147483648, %v3127_v6  ;;  %1606 = vmatpush3.bf16.xpose.msra.mxu1 %v1605_v16  ;;  %v1901_v19 = vpop.eup %1900  ;;  %v921_v7 = vsel %vm919_vm6, %v920_v63, %v918_v31  ;;  %v580_v22 = vmul.f32 %v1899_v50, %v3086_v56  ;;  %vm812_vm15 = vcmp.eq.f32.partialorder %v3137_v18, inf  ;;  %v2036_v31 = vld [vmem:[%s2564_s15 + $0x1b8] sm:$0xff] }
 0x16e   : > { %vm814_vm0 = vcmp.eq.f32.partialorder %v3137_v18, 0.0  ;;  %v3230_v48 = vpop.eup %1902  ;;  %1914 = vrcp.f32 %v995_v9  ;;  %v1027_v38 = vadd.f32 0.03125, %v921_v7  ;;  %v925_v8 = vsel %vm924_vm7, %v3069_v3, %v923_v36  ;;  %v2033_v3 = vld [vmem:[%s2564_s15 + $0xb0] sm:$0xff]  ;;  %v3291_v9 = vpop.xlane.xlu0 %451 }
 0x16f   : > { %v587_v39 = vmul.f32 %v1901_v19, %v3116_v52  ;;  %v1905_v32 = vpop.eup %1904  ;;  %1916 = vrcp.f32 %v996_v55  ;;  %v928_v33 = vsel %vm926_vm8, %v927_v5, %v925_v8  ;;  %v582_v23 = vsel %vm581_vm9, %v3086_v56, %v580_v22  ;;  %v2034_v56 = vld [vmem:[%s2564_s15 + $0xb8] sm:$0xff]  ;;  %v3303_v19 = vpop.xlane.xlu1 %453 }
 0x170   : > { %v815_v2 = vand.u32 2147483648, %v3137_v18  ;;  %v1907_v14 = vpop.eup %1906  ;;  %v1028_v45 = vadd.f32 0.03125, %v928_v33  ;;  %v585_v63 = vsel %vm583_vm10, %v584_v24, %v582_v23  ;;  %v1080_v46 = vmul.f32 %v2033_v3, %v3156_v1 }
 0x171   : > { %v589_v15 = vsel %vm588_vm11, %v3116_v52, %v587_v39  ;;  %v3251_v60 = vpop.eup %1908  ;;  %v979_v62 = vadd.f32 0.03125, %v585_v63  ;;  %v804_v59 = vmul.f32 %v1905_v32, %v3127_v6  ;;  %v811_v5 = vmul.f32 %v1907_v14, %v3137_v18  ;;  %v2038_v39 = vld [vmem:[%s2564_s15 + $0x38] sm:$0xff] }
 0x172   : > { %v592_v35 = vsel %vm590_vm12, %v591_v28, %v589_v15  ;;  %1918 = vrcp.f32 %v1027_v38  ;;  %vm707_vm1 = vcmp.eq.f32.partialorder %v3150_v21, inf  ;;  %vm709_vm2 = vcmp.eq.f32.partialorder %v3150_v21, 0.0  ;;  %v3324_v23 = vpop.xlane.xlu0 %515  ;;  %v2040_v63 = vld [vmem:[%s2564_s15 + $0x138] sm:$0xff] }
 0x173   : > { %v1082_v37 = vmul.f32 %v2034_v56, %v3164_v42  ;;  %v1911_v1 = vpop.eup %1910  ;;  %1920 = vrcp.f32 %v1028_v45  ;;  %v980_v24 = vadd.f32 0.03125, %v592_v35  ;;  %v806_v52 = vsel %vm805_vm13, %v3127_v6, %v804_v59 }
 0x174   : > { %v813_v61 = vsel %vm812_vm15, %v3137_v18, %v811_v5  ;;  %1922 = vrcp.f32 %v979_v62  ;;  %v809_v27 = vsel %vm807_vm14, %v808_v54, %v806_v52  ;;  %v706_v43 = vmul.f32 %v1911_v1, %v3150_v21 }
 0x175   : > { %v816_v42 = vsel %vm814_vm0, %v815_v2, %v813_v61  ;;  %v1011_v11 = vadd.f32 0.03125, %v809_v27  ;;  %v710_v47 = vand.u32 2147483648, %v3150_v21  ;;  %v1575_v49 = vpack.c.bf16 %v1082_v37, %v1080_v46  ;;  %v2041_v61 = vld [vmem:[%s2564_s15 + $0xc0] sm:$0xff] }
 0x176   : > { %v1913_v0 = vpop.eup %1912  ;;  %1924 = vrsqrt.f32 %v3185_v17  ;;  %v1012_v28 = vadd.f32 0.03125, %v816_v42  ;;  %v708_v6 = vsel %vm707_vm1, %v3150_v21, %v706_v43  ;;  %vm714_vm3 = vcmp.eq.f32.partialorder %v3169_v20, inf  ;;  %v2035_v21 = vld [vmem:[%s2564_s15 + $0x1b0] sm:$0xff]  ;;  %v2042_v42 = vld [vmem:[%s2564_s15 + $0xc8] sm:$0xff] }
 0x177   : > { %v713_v18 = vmul.f32 %v1913_v0, %v3169_v20  ;;  %1926 = vrsqrt.f32 %v3203_v29  ;;  %v711_v30 = vsel %vm709_vm2, %v710_v47, %v708_v6  ;;  %v717_v53 = vand.u32 2147483648, %v3169_v20  ;;  %1576 = vmatprep.subr.bf16.mxu0 %v1575_v49  ;;  %v3365_v47 = vpop.xlane.xlu0 %419 }
 0x178   : > { %1928 = vrcp.f32 %v980_v24  ;;  %v3287_v34 = vpop.eup %1914  ;;  %v997_v16 = vadd.f32 0.03125, %v711_v30  ;;  %vm716_vm4 = vcmp.eq.f32.partialorder %v3169_v20, 0.0  ;;  %v1144_v55 = vmul.f32 %v2035_v21, %v3171_v51 }
 0x179   : > { %1930 = vrcp.f32 %v1011_v11  ;;  %v715_v25 = vsel %vm714_vm3, %v3169_v20, %v713_v18  ;;  %v3293_v57 = vpop.eup %1916  ;;  %v1146_v36 = vmul.f32 %v2036_v31, %v3175_v40  ;;  %vm931_vm5 = vcmp.eq.f32.partialorder %v3185_v17, inf  ;;  %v2037_v40 = vld [vmem:[%s2564_s15 + $0x30] sm:$0xff] }
 0x17a   : > { %v718_v50 = vsel %vm716_vm4, %v717_v53, %v715_v25  ;;  %1932 = vrsqrt.f32 %v3223_v10  ;;  %vm933_vm6 = vcmp.eq.f32.partialorder %v3185_v17, 0.0  ;;  %v934_v51 = vand.u32 2147483648, %v3185_v17 }
 0x17b   : > { %1934 = vrcp.f32 %v1012_v28  ;;  %v998_v54 = vadd.f32 0.03125, %v718_v50  ;;  %v1607_v20 = vpack.c.bf16 %v1146_v36, %v1144_v55  ;;  %vm938_vm7 = vcmp.eq.f32.partialorder %v3203_v29, inf }
 0x17c   : > { %1936 = vrsqrt.f32 %v3242_v41  ;;  %v3305_v7 = vpop.eup %1918  ;;  %v1048_v22 = vmul.f32 %v2037_v40, %v3190_v26  ;;  %vm940_vm8 = vcmp.eq.f32.partialorder %v3203_v29, 0.0  ;;  %v941_v8 = vand.u32 2147483648, %v3203_v29  ;;  %v2043_v40 = vld [vmem:[%s2564_s15 + $0x1c0] sm:$0xff] }
 0x17d   : > { %1938 = vrcp.f32 %v997_v16  ;;  %v3311_v38 = vpop.eup %1920  ;;  %1608 = vmatprep.subr.bf16.mxu1 %v1607_v20  ;;  %v1050_v32 = vmul.f32 %v2038_v39, %v3205_v58  ;;  %vm595_vm9 = vcmp.eq.f32.partialorder %v3223_v10, inf  ;;  %vm597_vm10 = vcmp.eq.f32.partialorder %v3223_v10, 0.0  ;;  %v2039_v58 = vld [vmem:[%s2564_s15 + $0x130] sm:$0xff] }
 0x17e   : > { %1940 = vrsqrt.f32 %v3261_v44  ;;  %v3318_v33 = vpop.eup %1922  ;;  %v598_v26 = vand.u32 2147483648, %v3223_v10  ;;  %vm602_vm11 = vcmp.eq.f32.partialorder %v3242_v41, inf  ;;  %v1112_v45 = vmul.f32 %v2039_v58, %v3230_v48 }
 0x17f   : > { %1942 = vrsqrt.f32 %v3276_v4  ;;  %v1577_v14 = vpack.c.bf16 %v1050_v32, %v1048_v22  ;;  %v1114_v15 = vmul.f32 %v2040_v63, %v3251_v60  ;;  %vm604_vm12 = vcmp.eq.f32.partialorder %v3242_v41, 0.0  ;;  %v3340_v60 = vpop.xlane.xlu1 %517 }
 0x180   : > { %v1925_v2 = vpop.eup %1924  ;;  %1944 = vrcp.f32 %v998_v54  ;;  %v605_v62 = vand.u32 2147483648, %v3242_v41  ;;  %vm819_vm13 = vcmp.eq.f32.partialorder %v3261_v44, inf  ;;  %vm821_vm14 = vcmp.eq.f32.partialorder %v3261_v44, 0.0 }
 0x181   : > { %v1927_v3 = vpop.eup %1926  ;;  %v930_v46 = vmul.f32 %v1925_v2, %v3185_v17  ;;  %1946 = vrsqrt.f32 %v3291_v9  ;;  %1578 = vmatpush3.bf16.xpose.msra.mxu0 %v1577_v14  ;;  %v1609_v48 = vpack.c.bf16 %v1114_v15, %v1112_v45  ;;  %v822_v37 = vand.u32 2147483648, %v3261_v44  ;;  %v3402_v14 = vpop.xlane.xlu0 %483 }
 0x182   : > { %v3335_v35 = vpop.eup %1928  ;;  %v937_v59 = vmul.f32 %v1927_v3, %v3203_v29  ;;  %1948 = vrsqrt.f32 %v3303_v19  ;;  %vm826_vm15 = vcmp.eq.f32.partialorder %v3276_v4, inf  ;;  %v1084_v27 = vmul.f32 %v2041_v61, %v3287_v34 }
 0x183   : > { %v3342_v5 = vpop.eup %1930  ;;  %v932_v56 = vsel %vm931_vm5, %v3185_v17, %v930_v46  ;;  %1610 = vmatpush3.bf16.xpose.msra.mxu1 %v1609_v48  ;;  %v1086_v43 = vmul.f32 %v2042_v42, %v3293_v57  ;;  %vm828_vm0 = vcmp.eq.f32.partialorder %v3276_v4, 0.0  ;;  %v829_v17 = vand.u32 2147483648, %v3276_v4  ;;  %v3383_v50 = vpop.xlane.xlu1 %421 }
 0x184   : > { %v1933_v1 = vpop.eup %1932  ;;  %v935_v24 = vsel %vm933_vm6, %v934_v51, %v932_v56  ;;  %v939_v52 = vsel %vm938_vm7, %v3203_v29, %v937_v59  ;;  %1950 = vrsqrt.f32 %v3324_v23  ;;  %vm721_vm1 = vcmp.eq.f32.partialorder %v3291_v9, inf }
 0x185   : > { %v3359_v0 = vpop.eup %1934  ;;  %v594_v11 = vmul.f32 %v1933_v1, %v3223_v10  ;;  %v942_v28 = vsel %vm940_vm8, %v941_v8, %v939_v52  ;;  %vm723_vm2 = vcmp.eq.f32.partialorder %v3291_v9, 0.0  ;;  %v1579_v6 = vpack.c.bf16 %v1086_v43, %v1084_v27  ;;  %v3433_v1 = vpop.xlane.xlu0 %455  ;;  %v2045_v43 = vld [vmem:[%s2564_s15 + $0x40] sm:$0xff] }
 0x186   : > { %v1937_v49 = vpop.eup %1936  ;;  %v1029_v30 = vadd.f32 0.03125, %v935_v24  ;;  %v724_v16 = vand.u32 2147483648, %v3291_v9  ;;  %vm728_vm3 = vcmp.eq.f32.partialorder %v3303_v19, inf  ;;  %vm730_vm4 = vcmp.eq.f32.partialorder %v3303_v19, 0.0 }
 0x187   : > { %v3371_v18 = vpop.eup %1938  ;;  %v596_v53 = vsel %vm595_vm9, %v3223_v10, %v594_v11  ;;  %v601_v34 = vmul.f32 %v1937_v49, %v3242_v41  ;;  %v731_v57 = vand.u32 2147483648, %v3303_v19  ;;  %1580 = vmatprep.subr.bf16.mxu0 %v1579_v6  ;;  %v1030_v55 = vadd.f32 0.03125, %v942_v28 }
 0x188   : > { %v1941_v25 = vpop.eup %1940  ;;  %v599_v29 = vsel %vm597_vm10, %v598_v26, %v596_v53  ;;  %1952 = vrsqrt.f32 %v3340_v60  ;;  %v1148_v22 = vmul.f32 %v2043_v40, %v3305_v7  ;;  %v2044_v26 = vld [vmem:[%s2564_s15 + $0x1c8] sm:$0xff]  ;;  %vm945_vm5 = vcmp.eq.f32.partialorder %v3324_v23, inf }
 0x189   : > { %v1943_v21 = vpop.eup %1942  ;;  %v603_v31 = vsel %vm602_vm11, %v3242_v41, %v601_v34  ;;  %v818_v10 = vmul.f32 %v1941_v25, %v3261_v44  ;;  %v981_v54 = vadd.f32 0.03125, %v599_v29  ;;  %1954 = vrcp.f32 %v1029_v30 }
 0x18a   : > { %v3390_v36 = vpop.eup %1944  ;;  %v606_v20 = vsel %vm604_vm12, %v605_v62, %v603_v31  ;;  %v825_v51 = vmul.f32 %v1943_v21, %v3276_v4  ;;  %v1150_v2 = vmul.f32 %v2044_v26, %v3311_v38  ;;  %1956 = vrsqrt.f32 %v3365_v47  ;;  %v3417_v62 = vpop.xlane.xlu1 %485 }
 0x18b   : > { %v1947_v8 = vpop.eup %1946  ;;  %v982_v39 = vadd.f32 0.03125, %v606_v20  ;;  %v820_v32 = vsel %vm819_vm13, %v3261_v44, %v818_v10  ;;  %1958 = vrcp.f32 %v1030_v55  ;;  %vm947_vm6 = vcmp.eq.f32.partialorder %v3324_v23, 0.0  ;;  %v3461_v55 = vpop.xlane.xlu0 %519 }
 0x18c   : > { %v1949_v58 = vpop.eup %1948  ;;  %v823_v41 = vsel %vm821_vm14, %v822_v37, %v820_v32  ;;  %v827_v7 = vsel %vm826_vm15, %v3276_v4, %v825_v51  ;;  %v720_v45 = vmul.f32 %v1947_v8, %v3291_v9  ;;  %1960 = vrcp.f32 %v981_v54  ;;  %v2048_v54 = vld [vmem:[%s2564_s15 + $0x148] sm:$0xff] }
 0x18d   : > { %v1013_v63 = vadd.f32 0.03125, %v823_v41  ;;  %v830_v15 = vsel %vm828_vm0, %v829_v17, %v827_v7  ;;  %v727_v38 = vmul.f32 %v1949_v58, %v3303_v19  ;;  %v1611_v46 = vpack.c.bf16 %v1150_v2, %v1148_v22  ;;  %v2046_v17 = vld [vmem:[%s2564_s15 + $0x48] sm:$0xff]  ;;  %v2049_v2 = vld [vmem:[%s2564_s15 + $0xd0] sm:$0xff]  ;;  %v2050_v7 = vld [vmem:[%s2564_s15 + $0xd8] sm:$0xff] }
 0x18e   : > { %v1014_v3 = vadd.f32 0.03125, %v830_v15  ;;  %v722_v44 = vsel %vm721_vm1, %v3291_v9, %v720_v45  ;;  %v1951_v59 = vpop.eup %1950  ;;  %1962 = vrcp.f32 %v982_v39  ;;  %v948_v9 = vand.u32 2147483648, %v3324_v23 }
 0x18f   : > { %v725_v48 = vsel %vm723_vm2, %v724_v16, %v722_v44  ;;  %v729_v4 = vsel %vm728_vm3, %v3303_v19, %v727_v38  ;;  %1964 = vrcp.f32 %v1013_v63  ;;  %v944_v37 = vmul.f32 %v1951_v59, %v3324_v23  ;;  %1612 = vmatprep.subr.bf16.mxu1 %v1611_v46 }
 0x190   : > { %v732_v56 = vsel %vm730_vm4, %v731_v57, %v729_v4  ;;  %vm952_vm7 = vcmp.eq.f32.partialorder %v3340_v60, inf  ;;  %vm954_vm8 = vcmp.eq.f32.partialorder %v3340_v60, 0.0  ;;  %1966 = vrsqrt.f32 %v3383_v50  ;;  %v2047_v57 = vld [vmem:[%s2564_s15 + $0x140] sm:$0xff]  ;;  %v2051_v4 = vld [vmem:[%s2564_s15 + $0x1d0] sm:$0xff] }
 0x191   : > { %1968 = vrcp.f32 %v1014_v3  ;;  %v999_v19 = vadd.f32 0.03125, %v725_v48  ;;  %v946_v24 = vsel %vm945_vm5, %v3324_v23, %v944_v37  ;;  %v955_v52 = vand.u32 2147483648, %v3340_v60  ;;  %v3445_v23 = vpop.xlane.xlu1 %457 }
 0x192   : > { %v1953_v61 = vpop.eup %1952  ;;  %v1000_v27 = vadd.f32 0.03125, %v732_v56  ;;  %v949_v42 = vsel %vm947_vm6, %v948_v9, %v946_v24  ;;  %v1052_v11 = vmul.f32 %v2045_v43, %v3318_v33  ;;  %v1054_v49 = vmul.f32 %v2046_v17, %v3335_v35  ;;  %v2052_v24 = vld [vmem:[%s2564_s15 + $0x1d8] sm:$0xff] }
 0x193   : > { %v951_v28 = vmul.f32 %v1953_v61, %v3340_v60  ;;  %vm609_vm9 = vcmp.eq.f32.partialorder %v3365_v47, inf  ;;  %vm611_vm10 = vcmp.eq.f32.partialorder %v3365_v47, 0.0  ;;  %1970 = vrsqrt.f32 %v3402_v14  ;;  %v3447_v6 = vpop.eup %1954 }
 0x194   : > { %v612_v30 = vand.u32 2147483648, %v3365_v47  ;;  %vm616_vm11 = vcmp.eq.f32.partialorder %v3383_v50, inf  ;;  %v1581_v33 = vpack.c.bf16 %v1054_v49, %v1052_v11  ;;  %1972 = vrsqrt.f32 %v3417_v62  ;;  %v1957_v35 = vpop.eup %1956 }
 0x195   : > { %1974 = vrcp.f32 %v999_v19  ;;  %v1031_v53 = vadd.f32 0.03125, %v949_v42  ;;  %v953_v34 = vsel %vm952_vm7, %v3340_v60, %v951_v28  ;;  %vm618_vm12 = vcmp.eq.f32.partialorder %v3383_v50, 0.0  ;;  %v1959_v16 = vpop.eup %1958  ;;  %v3482_v39 = vpop.xlane.xlu1 %521 }
 0x196   : > { %1976 = vrcp.f32 %v1000_v27  ;;  %v956_v25 = vsel %vm954_vm8, %v955_v52, %v953_v34  ;;  %v608_v29 = vmul.f32 %v1957_v35, %v3365_v47  ;;  %1582 = vmatpush3.bf16.xpose.msra.mxu0 %v1581_v33  ;;  %v1116_v21 = vmul.f32 %v2047_v57, %v3342_v5  ;;  %v3463_v31 = vpop.eup %1960 }
 0x197   : > { %v619_v10 = vand.u32 2147483648, %v3383_v50  ;;  %vm833_vm13 = vcmp.eq.f32.partialorder %v3402_v14, inf  ;;  %v1118_v20 = vmul.f32 %v2048_v54, %v3359_v0  ;;  %1978 = vrsqrt.f32 %v3433_v1  ;;  %v2054_v54 = vld [vmem:[%s2564_s15 + $0x58] sm:$0xff] }
 0x198   : > { %v3470_v60 = vpop.eup %1962  ;;  %v1032_v51 = vadd.f32 0.03125, %v956_v25  ;;  %v610_v5 = vsel %vm609_vm9, %v3365_v47, %v608_v29  ;;  %vm835_vm14 = vcmp.eq.f32.partialorder %v3402_v14, 0.0  ;;  %1980 = vrsqrt.f32 %v3445_v23  ;;  %v2053_v25 = vld [vmem:[%s2564_s15 + $0x50] sm:$0xff] }
 0x199   : > { %v3477_v40 = vpop.eup %1964  ;;  %1982 = vrcp.f32 %v1031_v53  ;;  %v613_v0 = vsel %vm611_vm10, %v612_v30, %v610_v5  ;;  %v836_v22 = vand.u32 2147483648, %v3402_v14  ;;  %v1613_v8 = vpack.c.bf16 %v1118_v20, %v1116_v21 }
 0x19a   : > { %v1967_v32 = vpop.eup %1966  ;;  %vm840_vm15 = vcmp.eq.f32.partialorder %v3417_v62, inf  ;;  %vm842_vm0 = vcmp.eq.f32.partialorder %v3417_v62, 0.0  ;;  %v843_v26 = vand.u32 2147483648, %v3417_v62  ;;  %v1088_v58 = vmul.f32 %v2049_v2, %v3371_v18  ;;  %v3499_v18 = vpop.xlane.xlu0 %423 }
 0x19b   : > { %v3489_v41 = vpop.eup %1968  ;;  %v615_v47 = vmul.f32 %v1967_v32, %v3383_v50  ;;  %1614 = vmatpush3.bf16.xpose.msra.mxu1 %v1613_v8  ;;  %vm735_vm1 = vcmp.eq.f32.partialorder %v3433_v1, inf  ;;  %v1090_v45 = vmul.f32 %v2050_v7, %v3390_v36  ;;  %1984 = vrsqrt.f32 %v3461_v55 }
 0x19c   : > { %1986 = vrcp.f32 %v1032_v51  ;;  %v983_v63 = vadd.f32 0.03125, %v613_v0  ;;  %vm737_vm2 = vcmp.eq.f32.partialorder %v3433_v1, 0.0  ;;  %v738_v15 = vand.u32 2147483648, %v3433_v1 }
 0x19d   : > { %vm742_vm3 = vcmp.eq.f32.partialorder %v3445_v23, inf  ;;  %v1971_v38 = vpop.eup %1970  ;;  %v617_v3 = vsel %vm616_vm11, %v3383_v50, %v615_v47  ;;  %vm744_vm4 = vcmp.eq.f32.partialorder %v3445_v23, 0.0  ;;  %v1583_v36 = vpack.c.bf16 %v1090_v45, %v1088_v58  ;;  %v3518_v50 = vpop.xlane.xlu1 %425 }
 0x19e   : > { %1988 = vrsqrt.f32 %v3482_v39  ;;  %v1973_v44 = vpop.eup %1972  ;;  %v620_v46 = vsel %vm618_vm12, %v619_v10, %v617_v3  ;;  %v832_v59 = vmul.f32 %v1971_v38, %v3402_v14  ;;  %v745_v48 = vand.u32 2147483648, %v3445_v23  ;;  %v3541_v34 = vpop.xlane.xlu0 %487  ;;  %v2055_v3 = vld [vmem:[%s2564_s15 + $0x150] sm:$0xff] }
 0x19f   : > { %v1152_v56 = vmul.f32 %v2051_v4, %v3447_v6  ;;  %v3512_v37 = vpop.eup %1974  ;;  %v984_v9 = vadd.f32 0.03125, %v620_v46  ;;  %v839_v19 = vmul.f32 %v1973_v44, %v3417_v62  ;;  %1584 = vmatprep.subr.bf16.mxu0 %v1583_v36  ;;  %vm959_vm5 = vcmp.eq.f32.partialorder %v3461_v55, inf  ;;  %v2056_v44 = vld [vmem:[%s2564_s15 + $0x158] sm:$0xff] }
 0x1a0   : > { %v1154_v52 = vmul.f32 %v2052_v24, %v1959_v16  ;;  %1990 = vrsqrt.f32 %v3499_v18  ;;  %v3520_v61 = vpop.eup %1976  ;;  %v834_v27 = vsel %vm833_vm13, %v3402_v14, %v832_v59  ;;  %vm961_vm6 = vcmp.eq.f32.partialorder %v3461_v55, 0.0 }
 0x1a1   : > { %1992 = vrcp.f32 %v983_v63  ;;  %v962_v42 = vand.u32 2147483648, %v3461_v55  ;;  %v1979_v43 = vpop.eup %1978  ;;  %v837_v11 = vsel %vm835_vm14, %v836_v22, %v834_v27  ;;  %v841_v17 = vsel %vm840_vm15, %v3417_v62, %v839_v19  ;;  %v3562_v32 = vpop.xlane.xlu1 %489 }
 0x1a2   : > { %1994 = vrcp.f32 %v984_v9  ;;  %v1615_v49 = vpack.c.bf16 %v1154_v52, %v1152_v56  ;;  %v1981_v28 = vpop.eup %1980  ;;  %v1015_v6 = vadd.f32 0.03125, %v837_v11  ;;  %v844_v30 = vsel %vm842_vm0, %v843_v26, %v841_v17  ;;  %v2060_v11 = vld [vmem:[%s2564_s15 + $0x1e8] sm:$0xff] }
 0x1a3   : > { %v734_v33 = vmul.f32 %v1979_v43, %v3433_v1  ;;  %1996 = vrsqrt.f32 %v3518_v50  ;;  %v3536_v35 = vpop.eup %1982  ;;  %v1016_v14 = vadd.f32 0.03125, %v844_v30  ;;  %v741_v53 = vmul.f32 %v1981_v28, %v3445_v23  ;;  %v2061_v28 = vld [vmem:[%s2564_s15 + $0x60] sm:$0xff] }
 0x1a4   : > { %vm966_vm7 = vcmp.eq.f32.partialorder %v3482_v39, inf  ;;  %vm968_vm8 = vcmp.eq.f32.partialorder %v3482_v39, 0.0  ;;  %1616 = vmatprep.subr.bf16.mxu1 %v1615_v49  ;;  %1998 = vrcp.f32 %v1015_v6  ;;  %v969_v16 = vand.u32 2147483648, %v3482_v39 }
 0x1a5   : > { %v736_v62 = vsel %vm735_vm1, %v3433_v1, %v734_v33  ;;  %v1056_v29 = vmul.f32 %v2053_v25, %v3463_v31  ;;  %v1985_v57 = vpop.eup %1984  ;;  %2000 = vrcp.f32 %v1016_v14  ;;  %v743_v10 = vsel %vm742_vm3, %v3445_v23, %v741_v53 }
 0x1a6   : > { %v739_v21 = vsel %vm737_vm2, %v738_v15, %v736_v62  ;;  %v1058_v20 = vmul.f32 %v2054_v54, %v3470_v60  ;;  %v1987_v51 = vpop.eup %1986  ;;  %v746_v0 = vsel %vm744_vm4, %v745_v48, %v743_v10  ;;  %v958_v22 = vmul.f32 %v1985_v57, %v3461_v55  ;;  %v2063_v62 = vld [vmem:[%s2564_s15 + $0x160] sm:$0xff] }
 0x1a7   : > { %v1001_v5 = vadd.f32 0.03125, %v739_v21  ;;  %2002 = vrsqrt.f32 %v3541_v34  ;;  %v1002_v8 = vadd.f32 0.03125, %v746_v0  ;;  %vm623_vm9 = vcmp.eq.f32.partialorder %v3499_v18, inf  ;;  %v2064_v21 = vld [vmem:[%s2564_s15 + $0x168] sm:$0xff] }
 0x1a8   : > { %v1989_v31 = vpop.eup %1988  ;;  %vm625_vm10 = vcmp.eq.f32.partialorder %v3499_v18, 0.0  ;;  %v1585_v1 = vpack.c.bf16 %v1058_v20, %v1056_v29  ;;  %v960_v60 = vsel %vm959_vm5, %v3461_v55, %v958_v22  ;;  %v626_v26 = vand.u32 2147483648, %v3499_v18  ;;  %v2065_v22 = vld [vmem:[%s2564_s15 + $0xf0] sm:$0xff] }
 0x1a9   : > { %2004 = vrcp.f32 %v1001_v5  ;;  %v965_v23 = vmul.f32 %v1989_v31, %v3482_v39  ;;  %v963_v58 = vsel %vm961_vm6, %v962_v42, %v960_v60  ;;  %vm630_vm11 = vcmp.eq.f32.partialorder %v3518_v50, inf  ;;  %v2059_v42 = vld [vmem:[%s2564_s15 + $0x1e0] sm:$0xff]  ;;  %v2066_v60 = vld [vmem:[%s2564_s15 + $0xf8] sm:$0xff] }
 0x1aa   : > { %v1991_v2 = vpop.eup %1990  ;;  %2006 = vrcp.f32 %v1002_v8  ;;  %vm632_vm12 = vcmp.eq.f32.partialorder %v3518_v50, 0.0  ;;  %1586 = vmatpush3.bf16.xpose.msra.mxu0 %v1585_v1  ;;  %v1033_v7 = vadd.f32 0.03125, %v963_v58  ;;  %v633_v38 = vand.u32 2147483648, %v3518_v50  ;;  %v1184_v33 = vpop.xlane.xlu0 %1183 }
 0x1ab   : > { %v1993_v47 = vpop.eup %1992  ;;  %v967_v45 = vsel %vm966_vm7, %v3482_v39, %v965_v23  ;;  %v622_v63 = vmul.f32 %v1991_v2, %v3499_v18  ;;  %2008 = vrsqrt.f32 %v3562_v32  ;;  %v1120_v36 = vmul.f32 %v2055_v3, %v3477_v40  ;;  %v2057_v39 = vld [vmem:[%s2564_s15 + $0xe0] sm:$0xff] }
 0x1ac   : > { %v1995_v15 = vpop.eup %1994  ;;  %v970_v55 = vsel %vm968_vm8, %v969_v16, %v967_v45  ;;  %v1122_v46 = vmul.f32 %v2056_v44, %v3489_v41  ;;  %2010 = vrcp.f32 %v1033_v7  ;;  %v1092_v56 = vmul.f32 %v2057_v39, %v3512_v37  ;;  %v2058_v41 = vld [vmem:[%s2564_s15 + $0xe8] sm:$0xff]  ;;  %v2068_v44 = vld [vmem:[%s2564_s15 + $0x1f8] sm:$0xff] }
 0x1ad   : > { %v1997_v59 = vpop.eup %1996  ;;  %v1034_v48 = vadd.f32 0.03125, %v970_v55  ;;  %v624_v4 = vsel %vm623_vm9, %v3499_v18, %v622_v63  ;;  %v1094_v24 = vmul.f32 %v2058_v41, %v3520_v61  ;;  %v1156_v43 = vmul.f32 %v2059_v42, %v3536_v35  ;;  %v2062_v61 = vld [vmem:[%s2564_s15 + $0x68] sm:$0xff]  ;;  %v2070_v39 = vld [vmem:[%s2564_s15 + $0x78] sm:$0xff] }
 0x1ae   : > { %v627_v9 = vsel %vm625_vm10, %v626_v26, %v624_v4  ;;  %v629_v40 = vmul.f32 %v1997_v59, %v3518_v50  ;;  %v1617_v19 = vpack.c.bf16 %v1122_v46, %v1120_v36  ;;  %v1999_v52 = vpop.eup %1998  ;;  %v1158_v37 = vmul.f32 %v2060_v11, %v1987_v51  ;;  %v1190_v11 = vld [vmem:[%s2578_s4 + $0x8] sm:$0xff] }
 0x1af   : > { %2012 = vrcp.f32 %v1034_v48  ;;  %v985_v27 = vadd.f32 0.03125, %v627_v9  ;;  %v2001_v17 = vpop.eup %2000  ;;  %v1587_v49 = vpack.c.bf16 %v1094_v24, %v1092_v56  ;;  %v1060_v6 = vmul.f32 %v2061_v28, %v1993_v47  ;;  %v1191_v28 = vld [vmem:[%s2578_s4 + $0x10] sm:$0xff] }
 0x1b0   : > { %v631_v18 = vsel %vm630_vm11, %v3518_v50, %v629_v40  ;;  %1618 = vmatpush3.bf16.xpose.msra.mxu1 %v1617_v19  ;;  %v1062_v30 = vmul.f32 %v2062_v61, %v1995_v15  ;;  %v1619_v53 = vpack.c.bf16 %v1158_v37, %v1156_v43  ;;  %v1124_v16 = vmul.f32 %v2063_v62, %v1999_v52  ;;  %v2071_v19 = vld [vmem:[%s2564_s15 + $0x170] sm:$0xff]  ;;  %v2072_v52 = vld [vmem:[%s2564_s15 + $0x178] sm:$0xff]  ;;  %v1189_v43 = vld [vmem:[%s2578_s4] sm:$0xff] }
 0x1b1   : > { %v2003_v14 = vpop.eup %2002  ;;  %2014 = vrcp.f32 %v985_v27  ;;  %v634_v35 = vsel %vm632_vm12, %v633_v38, %v631_v18  ;;  %1588 = vmatprep.subr.bf16.mxu0 %v1587_v49  ;;  %v1126_v10 = vmul.f32 %v2064_v21, %v2001_v17  ;;  %vm847_vm13 = vcmp.eq.f32.partialorder %v3541_v34, inf }
 0x1b2   : > { %v986_v25 = vadd.f32 0.03125, %v634_v35  ;;  %v846_v29 = vmul.f32 %v2003_v14, %v3541_v34  ;;  %v1589_v57 = vpack.c.bf16 %v1062_v30, %v1060_v6  ;;  %vm849_vm14 = vcmp.eq.f32.partialorder %v3541_v34, 0.0  ;;  %1620 = vmatprep.subr.bf16.mxu1 %v1619_v53  ;;  %v1192_v6 = vld [vmem:[%s2578_s4 + $0x18] sm:$0xff] }
 0x1b3   : > { %v2005_v54 = vpop.eup %2004  ;;  %v850_v50 = vand.u32 2147483648, %v3541_v34  ;;  %v1185_v20 = vmul.f32 3.0, %v1184_v33  ;;  %v1621_v0 = vpack.c.bf16 %v1126_v10, %v1124_v16  ;;  %vm854_vm15 = vcmp.eq.f32.partialorder %v3562_v32, inf }
 0x1b4   : > { %v2007_v51 = vpop.eup %2006  ;;  %2016 = vrcp.f32 %v986_v25  ;;  %v848_v5 = vsel %vm847_vm13, %v3541_v34, %v846_v29  ;;  %1590 = vmatpush3.bf16.xpose.msra.mxu0 %v1589_v57  ;;  %v1096_v31 = vmul.f32 %v2065_v22, %v2005_v54  ;;  %v857_v34 = vand.u32 2147483648, %v3562_v32 }
 0x1b5   : > { %v2009_v8 = vpop.eup %2008  ;;  %v851_v1 = vsel %vm849_vm14, %v850_v50, %v848_v5  ;;  %v1098_v23 = vmul.f32 %v2066_v60, %v2007_v51  ;;  %v1186_v26 = vmul.f32 %v1185_v20, %v2744_v13  ;;  %vm856_vm0 = vcmp.eq.f32.partialorder %v3562_v32, 0.0  ;;  %v2067_v13 = vld [vmem:[%s2564_s15 + $0x1f0] sm:$0xff] }
 0x1b6   : > { %v1017_v2 = vadd.f32 0.03125, %v851_v1  ;;  %v853_v58 = vmul.f32 %v2009_v8, %v3562_v32  ;;  %v2011_v47 = vpop.eup %2010 }
 0x1b7   : > { %v1591_v7 = vpack.c.bf16 %v1098_v23, %v1096_v31  ;;  %v1187_v45 = vsub.f32 %v2742_v12, %v1186_v26  ;;  %v1160_v15 = vmul.f32 %v2067_v13, %v2011_v47 }
 0x1b8   : > { %2018 = vrcp.f32 %v1017_v2  ;;  %v855_v63 = vsel %vm854_vm15, %v3562_v32, %v853_v58  ;;  %1622 = vmatpush3.bf16.xpose.msra.mxu1 %v1621_v0  ;;  %v2069_v32 = vld [vmem:[%s2564_s15 + $0x70] sm:$0xff] }
 0x1b9   : > { %v2013_v55 = vpop.eup %2012  ;;  %v858_v38 = vsel %vm856_vm0, %v857_v34, %v855_v63  ;;  %1592 = vmatprep.subr.bf16.mxu0 %v1591_v7  ;;  %v1188_v3 = vmul.f32 8.0, %v1187_v45 }
 0x1ba   : > { %v1018_v36 = vadd.f32 0.03125, %v858_v38  ;;  %v1162_v46 = vmul.f32 %v2068_v44, %v2013_v55 }
 0x1bb   : > { %v2015_v59 = vpop.eup %2014  ;;  %1527 = vmatprep.mubr.f32.mxu0 %v1188_v3  ;;  %1561 = vmatprep.mubr.f32.mxu1 %v1188_v3 }
 0x1bc   : > { %2020 = vrcp.f32 %v1018_v36  ;;  %v1623_v12 = vpack.c.bf16 %v1162_v46, %v1160_v15  ;;  %v1064_v48 = vmul.f32 %v2069_v32, %v2015_v59 }
 0x1be   : > { %v2017_v4 = vpop.eup %2016  ;;  %1624 = vmatprep.subr.bf16.mxu1 %v1623_v12 }
 0x1bf   : > { %v1066_v56 = vmul.f32 %v2070_v39, %v2017_v4 }
 0x1c1   : > { %v1593_v9 = vpack.c.bf16 %v1066_v56, %v1064_v48 }
 0x1c2   : > { %v2019_v40 = vpop.eup %2018 }
 0x1c3   : > { %1594 = vmatpush3.bf16.xpose.msra.mxu0 %v1593_v9  ;;  %v1128_v41 = vmul.f32 %v2071_v19, %v2019_v40 }
 0x1c6   : > { %v2021_v24 = vpop.eup %2020 }
 0x1c7   : > { %v1130_v27 = vmul.f32 %v2072_v52, %v2021_v24 }
 0x1c9   : > { %v1625_v42 = vpack.c.bf16 %v1130_v27, %v1128_v41 }
 0x1ca   : > { %1528 = vmatmul.mubr.f32.vlgmr.msra.gmra.mrb[0].mxu0 %v1188_v3 }
 0x1cb   : > { %1626 = vmatpush3.bf16.xpose.msra.mxu1 %v1625_v42 }
 0x1d2   : > { %1562 = vmatmul.mubr.f32.vlgmr.msra.gmra.mrb[0].mxu1 %v1188_v3 }
 0x29d   : > { %v1259_v37 = vpop.f32.mrb[0].mxu0 }
 0x29e   : > { %v1335_v17 = vadd.f32 %v1259_v37, %v1189_v43  ;;  %v1261_v18 = vpop.f32.mrb[1].mxu0 }
 0x29f   : > { %v1336_v49 = vadd.f32 %v1261_v18, %v1190_v11 }
 0x2a0   : > { %1339 = vst [vmem:[%s2578_s4] sm:$0xff] %v1335_v17 }
 0x2a1   : > { %1340 = vst [vmem:[%s2578_s4 + $0x8] sm:$0xff] %v1336_v49 }
 0x2a5   : > { %v1330_v61 = vpop.f32.mrb[0].mxu1 }
 0x2a6   : > { %v1337_v30 = vadd.f32 %v1330_v61, %v1191_v28  ;;  %v1332_v33 = vpop.f32.mrb[1].mxu1 }
 0x2a7   : > { %v1338_v14 = vadd.f32 %v1332_v33, %v1192_v6 }
 0x2a8   : > { %1341 = vst [vmem:[%s2578_s4 + $0x10] sm:$0xff] %v1337_v30 }
 0x2a9   : > { %1342 = vst [vmem:[%s2578_s4 + $0x18] sm:$0xff] %v1338_v14 }
 0x2aa   : > { %2146 = shalt.err (!%p2143_p7)
}
 0x2ab   : > { %s2147_s15 = scalar_lea.hbm %s3638_s24, 512  ;;  %s2151_s5 = scalar_lea.hbm %s3722_s3, 1024 }
 0x2ac   : > { %p2148_p12 = scmp.ne.s32.totalorder %s3638_s24, %s2147_s15  ;;  %p2152_p11 = scmp.lt.u32.totalorder %s3638_s24, %s3722_s3 }
 0x2ad   : > { %p2153_p1 = scmp.lt.u32.totalorder %s2151_s5, %s2147_s15  ;;  %p2155_p13 = scmp.lt.u32.totalorder %s2147_s15, %s3638_s24 }
 0x2ae   : > { %p2149_p3 = pnand %p2148_p12, %p3752_p5 }
 0x2af   : > { %p2154_p4 = por %p2153_p1, %p2152_p11 }
 0x2b0   : > { %p2150_p0 = pneg %p2149_p3 }
 0x2b1   : > { %p2156_p2 = por %p2155_p13, %p2154_p4 }
 0x2b3   : > { %p2157_p6 = pnand %p2156_p2, %p2150_p0 }
 0x2b5   : > { %2160 = shalt.err (!%p2157_p6)
}
 0x2b6   : > { %1631 = dma.vmem_to_hbm [thread:$0]  (%p3752_p5), %s3640_s27, 512, %s3638_s24, %s1344_s11  }
 0x2b7 PF: > { %p1645_p9 = scmp.ge.s32.totalorder %s2283_s25, 2  ;;  %s1370_s29 = sand.u32 1, %s2231_s12  }
 0x2b8   : > { %p3753_p8 = scmp.ne.s32.totalorder %s3746_s6, 0  ;;  %s1371_s4 = scalar_lea.sflag [#allocation4], %s1370_s29 }
 0x2ba   : > { %p1641_p10 = pnand %p1645_p9, %p3753_p8 }
 0x2bc   : > { %2226 = dma.done.wait (!%p1641_p10), %s1371_s4, 512  }
 0x2bd   : > { %2228 = vsyncadd (!%p1641_p10), %s1371_s4, 4294966784  ;;  %s22_s25 = sadd.s32 1, %s2283_s25   ;;  %s3755_s9 = sld [smem:[#allocation11_spill]] }
 0x2be   : > { %p3672_p7 = scmp.ge.s32.totalorder %s22_s25, 6   ;;  %s3756_s14 = sld [smem:[#allocation18_spill]] }
 0x2bf   : > { %s3757_s27 = sld [smem:[#allocation17_spill]]  ;;  %s3758_s30 = sld [smem:[#allocation12_spill]] }
 0x2c0   : > { %s3759_s20 = sld [smem:[#allocation16_spill]]  ;;  %s3760_s22 = sld [smem:[#allocation13_spill]] }
 0x2c1   : > { %s3761_s6 = sld [smem:[#allocation14_spill]]  ;;  %s3762_s24 = sld [smem:[#allocation15_spill]] }
 0x2c2   : > { %s3764_s12 = smov %s2235_s13  ;;  %s3766_s15 = smov %s2247_s16 }
 0x2c3   : > { %s3765_s13 = smov %s3755_s9  ;;  %s3767_s16 = smov %s2251_s17 }
 0x2c4   : > { %s3769_s18 = smov %s2259_s19  ;;  %s3771_s21 = smov %s2275_s23 }
 0x2c5   : > { %s3768_s17 = smov %s3757_s27  ;;  %s3770_s19 = smov %s3758_s30 }
 0x2c6   :  { %21 = sbr.rel (!%p3672_p7) target bundleno = 12 (0xc), region = 97 }
 0x2c7   : > { %s3772_s23 = smov %s3761_s6 }
 0x2cd   :  { %1376 = vsyncpa [#allocation3], 1 }
 0x2ce   :  { %1378 = vsyncpa [#allocation3 + $0x1], 1 }
 0x2cf   :  { %1379 = vsyncpa [#allocation6], 1 }
 0x2d0   :  { %1381 = vsyncpa [#allocation6 + $0x1], 1 }
 0x2d1   :  { %1382 = vsyncpa [#allocation4], 1 }
 0x2d2   :  { %1384 = vsyncpa [#allocation4 + $0x1], 1 }

</bundles_post_ra>
